<compile_context>
chip_gen: v7x
topology: tpu7x:2x2x1
jax: 0.10.0
libtpu: 0.0.40
codegen_flags: <defaults>
</compile_context>

<pallas_src>
import functools

import numpy as np
import jax
import jax.numpy as jnp
from jax.experimental import pallas as pl
from jax.experimental.pallas import tpu as pltpu


def _round_up(x, m):
    return ((x + m - 1) // m) * m


def _to_i32(c):
    """Reinterpret a 32-bit unsigned constant as a Python int in int32 range."""
    return c - (1 << 32) if c >= (1 << 31) else c


# --------------------------- in-kernel hash PRNG ------------------------------
# pltpu.prng_* has no CPU/interpret lowering, so dropout uses a counter-based
# hash built from int32 mul/xor/shift only (wraps mod 2^32 as XLA integers do).
# One Bernoulli draw per element per hop -- statistically equivalent to the
# torch RNG stream, not bit-identical.

def _lshr32(x, n):
    """Logical right shift on int32."""
    return (x >> n) & jnp.int32((1 << (32 - n)) - 1)


def _uniform24(rows_i32, cols_i32, seed_i32):
    """Hash (row, col, seed) -> int32 uniform in [0, 2^24)."""
    x = ((rows_i32 * jnp.int32(_to_i32(0x9E3779B1)))
         ^ (cols_i32 * jnp.int32(_to_i32(0x85EBCA77)))
         ^ seed_i32)
    x = x ^ _lshr32(x, 16)
    x = x * jnp.int32(_to_i32(0x7FEB352D))
    x = x ^ _lshr32(x, 15)
    x = x * jnp.int32(_to_i32(0x846CA68B))
    x = x ^ _lshr32(x, 16)
    return _lshr32(x, 8)


# ----------------------------- Pallas kernel ---------------------------------

def _spmm_kernel(seeds_ref, cols_ref, cnt_ref,      # scalar-prefetch (SMEM)
                 adj_ref, x_ref,                    # inputs (VMEM)
                 o_ref,                             # output (VMEM tile)
                 acc_ref,                           # f32 accumulator scratch
                 *, tm, tk, max_blocks, x_resident, edge_rate, mess_rate):
    i = pl.program_id(0)          # row tile of the adjacency / output
    k = pl.program_id(1)          # slot in the per-row-tile block schedule

    @pl.when(k == 0)
    def _init():
        acc_ref[...] = jnp.zeros_like(acc_ref)

    # Only slots < cnt[i] reference a real nonzero adjacency block; padded
    # slots re-use the last valid block index, so Pallas skips their DMAs and
    # this branch skips their compute.
    @pl.when(k < cnt_ref[i])
    def _accumulate():
        a = adj_ref[...]                                    # (tm, tk) bf16
        col_blk = cols_ref[i * max_blocks + k]

        if edge_rate is not None and edge_rate > 0.0:
            # torch _sparse_dropout semantics: an entry is kept iff
            # floor(rate + U) == 1, i.e. with probability `rate`; the
            # 1/(1-rate) rescale is applied once in the writeback.
            rows = jax.lax.broadcasted_iota(jnp.int32, (tm, tk), 0) + i * tm
            cols = jax.lax.broadcasted_iota(jnp.int32, (tm, tk), 1) + col_blk * tk
            u24 = _uniform24(rows, cols, seeds_ref[0])
            thresh = int(round((1.0 - edge_rate) * float(1 << 24)))
            keep = u24 >= jnp.int32(thresh)
            a = jnp.where(keep, a, jnp.zeros_like(a))

        if x_resident:
            # x fully resident in VMEM; slice the needed (tk, Dp) row band.
            xb = x_ref[pl.ds(col_blk * tk, tk), :]
        else:
            xb = x_ref[...]                                 # gathered (tk, Dp)
        acc_ref[...] += jnp.dot(a, xb, preferred_element_type=jnp.float32)

    @pl.when(k == pl.num_programs(1) - 1)
    def _writeback():
        out = acc_ref[...]
        if edge_rate is not None and edge_rate > 0.0:
            out = out * jnp.float32(1.0 / (1.0 - edge_rate))
        if mess_rate is not None and mess_rate > 0.0:
            # Fused mess (feature) dropout: keep prob = 1 - p, scaled 1/(1-p).
            dp = out.shape[-1]
            rows = jax.lax.broadcasted_iota(jnp.int32, (tm, dp), 0) + i * tm
            cols = jax.lax.broadcasted_iota(jnp.int32, (tm, dp), 1)
            u24 = _uniform24(rows, cols, seeds_ref[1])
            keep = u24 >= jnp.int32(int(round(mess_rate * float(1 << 24))))
            out = jnp.where(keep, out, jnp.zeros_like(out)) * jnp.float32(
                1.0 / (1.0 - mess_rate))
        o_ref[...] = out.astype(o_ref.dtype)


def spmm_block_sparse(adj_pad, cols_flat, cnt, x_pad, *, tm, tk, Dp, Npad,
                      max_blocks, total_blocks, x_resident, adj_buffer_count,
                      vmem_limit_bytes, edge_rate=None, mess_rate=None,
                      seeds=None):
    """out_pad = (optionally edge/mess-dropped) adj_pad @ x_pad, (Npad, Dp) f32."""
    nr = Npad // tm
    if seeds is None:
        seeds = jnp.zeros((2,), jnp.int32)

    adj_kwargs = {}
    if adj_buffer_count is not None and adj_buffer_count > 2:
        adj_kwargs["pipeline_mode"] = pl.Buffered(int(adj_buffer_count))
    adj_spec = pl.BlockSpec(
        (tm, tk), lambda i, k, seeds, cols, cnt: (i, cols[i * max_blocks + k]),
        **adj_kwargs)

    if x_resident:
        # Constant index map -> DMA'd once, stays resident across the sweep.
        x_spec = pl.BlockSpec((Npad, Dp), lambda i, k, seeds, cols, cnt: (0, 0))
    else:
        x_spec = pl.BlockSpec(
            (tk, Dp), lambda i, k, seeds, cols, cnt: (cols[i * max_blocks + k], 0))

    out_spec = pl.BlockSpec((tm, Dp), lambda i, k, seeds, cols, cnt: (i, 0))

    nblk = max(int(total_blocks), 1)
    cost = pl.CostEstimate(
        flops=2 * nblk * tm * tk * Dp,
        transcendentals=0,
        bytes_accessed=(nblk * tm * tk * 2
                        + (Npad * Dp * 2 if x_resident else nblk * tk * Dp * 2)
                        + Npad * Dp * 4))

    kernel = functools.partial(
        _spmm_kernel, tm=tm, tk=tk, max_blocks=max_blocks,
        x_resident=x_resident, edge_rate=edge_rate, mess_rate=mess_rate)

    return pl.pallas_call(
        kernel,
        out_shape=jax.ShapeDtypeStruct((Npad, Dp), jnp.float32),
        grid_spec=pltpu.PrefetchScalarGridSpec(
            num_scalar_prefetch=3,
            grid=(nr, max_blocks),
            in_specs=[adj_spec, x_spec],
            out_specs=out_spec,
            scratch_shapes=[pltpu.VMEM((tm, Dp), jnp.float32)]),
        compiler_params=pltpu.CompilerParams(
            dimension_semantics=("parallel", "arbitrary"),
            vmem_limit_bytes=int(vmem_limit_bytes)),
        cost_estimate=cost,
    )(seeds, cols_flat, cnt, adj_pad, x_pad)


# --------------------------- host-side schedule --------------------------------

_STEP_OVERHEAD_BYTES = 400_000     # ~0.35 us/grid-step at ~1.1-1.4 TB/s HBM


def _block_pattern(nz_elems, N, tm, tk):
    """Bool (nr, nk) map of (tm, tk) blocks containing at least one nonzero."""
    Npad = _round_up(N, max(tm, tk))
    nr, nk = Npad // tm, Npad // tk
    padded = np.zeros((Npad, Npad), dtype=bool)
    padded[:N, :N] = nz_elems
    return padded.reshape(nr, tm, nk, tk).any(axis=(1, 3))


def _choose_tiles(nz_elems, N):
    """Sweep (tm, tk): minimize adjacency bytes streamed + per-step overhead."""
    n128 = _round_up(N, 128)
    cap = 128
    while cap < min(n128, 2048):
        cap *= 2
    cands = [t for t in (128, 256, 512, 1024, 2048) if t <= cap]
    best = None
    for tm in cands:
        for tk in cands:
            # Coarse VMEM feasibility at 2-deep buffering (Dp guess 128);
            # the precise budget is rechecked at call time.
            vmem = 2 * tm * tk * 2 + 3 * tm * 128 * 4 + 2 * tk * 128 * 2
            if vmem > 32 * 1024 * 1024:
                continue
            nz = _block_pattern(nz_elems, N, tm, tk)
            cnt = nz.sum(axis=1)
            steps = nz.shape[0] * max(int(cnt.max()), 1)
            cost = int(cnt.sum()) * tm * tk * 2 + steps * _STEP_OVERHEAD_BYTES
            if best is None or cost < best[0]:
                best = (cost, tm, tk)
    return best[1], best[2]


# ----------------------------- Module wrapper ---------------------------------

class GraphConv:
    """JAX/Pallas port of cogdl lightgcn GraphConv (forward only)."""

    def __init__(self, n_hops, n_users, interact_mat,
                 edge_dropout_rate=0.5, mess_dropout_rate=0.1,
                 tm=None, tk=None, x_resident=None, adj_buffer_count=None):
        # interact_mat is given densified (N, N); must be concrete at init so
        # the block-sparsity schedule / tile sweep run on the host.
        dense = np.asarray(interact_mat, dtype=np.float32)
        N = dense.shape[0]
        assert dense.shape == (N, N)
        nz_elems = dense != 0

        if tm is None or tk is None:
            tm, tk = _choose_tiles(nz_elems, N)
        assert tm % 16 == 0 and tk % 128 == 0       # bf16 sublane pack is 16
        assert max(tm, tk) % min(tm, tk) == 0       # single common padding

        Npad = _round_up(N, max(tm, tk))
        nr = Npad // tm

        # Host-side block schedule: which tk-wide column blocks of each row
        # tile contain at least one nonzero.
        nz = _block_pattern(nz_elems, N, tm, tk)
        cnt = nz.sum(axis=1).astype(np.int32)
        max_blocks = max(int(cnt.max()), 1)
        cols = np.zeros((nr, max_blocks), np.int32)
        for r in range(nr):
            idx = np.flatnonzero(nz[r]).astype(np.int32)
            if idx.size:
                cols[r, :idx.size] = idx
                # Pad with the LAST valid index: padded slots keep the block
                # index unchanged, so Pallas skips their adjacency/x DMAs.
                cols[r, idx.size:] = idx[-1]

        adj_np = np.zeros((Npad, Npad), np.float32)
        adj_np[:N, :N] = dense

        self.adj_pad = jnp.asarray(adj_np, jnp.bfloat16)   # bf16 once, at init
        self.cols = jnp.asarray(cols.reshape(-1))           # flat 1-D SMEM table
        self.cnt = jnp.asarray(cnt)
        self.max_blocks = max_blocks
        self.total_blocks = int(cnt.sum())
        self.tm, self.tk, self.Npad = tm, tk, Npad
        self.x_resident_override = x_resident
        self.adj_buffer_count = adj_buffer_count

        self.n_nodes = N
        self.n_users = n_users
        self.n_hops = n_hops
        self.edge_dropout_rate = float(edge_dropout_rate)
        self.mess_dropout_rate = float(mess_dropout_rate)

    # Per-call plan: x residency, adjacency pipeline depth, explicit VMEM cap.
    def _plan(self, Dp):
        tm, tk, Npad = self.tm, self.tk, self.Npad
        if self.x_resident_override is not None:
            x_resident = bool(self.x_resident_override)
        else:
            # Conservative: fits comfortably even on v7x (64 MiB) / v5e budgets.
            x_resident = 2 * Npad * Dp * 2 <= 8 * 1024 * 1024

        def need(bufs):
            x_bytes = 2 * Npad * Dp * 2 if x_resident else 2 * tk * Dp * 2
            return bufs * tm * tk * 2 + x_bytes + tm * Dp * 4 + 2 * tm * Dp * 4

        if self.adj_buffer_count is not None:
            bufs = int(self.adj_buffer_count)
        elif jax.default_backend() == "tpu" and self.max_blocks >= 4:
            bufs = 3   # deeper adjacency buffering for long gather sweeps
        else:
            bufs = 2
        while bufs > 2 and need(bufs) > 36 * 1024 * 1024:
            bufs -= 1
        vmem_limit = min(56 * 1024 * 1024,
                         max(32 * 1024 * 1024, need(bufs) + 8 * 1024 * 1024))
        return x_resident, bufs, vmem_limit

    def __call__(self, user_embed, item_embed,
                 mess_dropout=True, edge_dropout=True, rng=None):
        if rng is None:
            rng = jax.random.PRNGKey(0)
        all_embed = jnp.concatenate([user_embed, item_embed], axis=0)
        all_embed = all_embed.astype(jnp.float32)
        N = self.n_nodes
        D = all_embed.shape[1]
        Dp = _round_up(D, 128)
        Npad = self.Npad
        x_resident, adj_bufs, vmem_limit = self._plan(Dp)

        # Pad/cast once; later hops chain through the padded f32 kernel output
        # (padding rows/cols stay zero), so no per-hop zeros+scatter repack.
        x_pad = jnp.zeros((Npad, Dp), jnp.bfloat16)
        x_pad = x_pad.at[:N, :D].set(all_embed.astype(jnp.bfloat16))

        edge_rate = self.edge_dropout_rate if edge_dropout else None
        mess_rate = self.mess_dropout_rate if mess_dropout else None

        embs = [all_embed]
        for _ in range(self.n_hops):
            rng, sub = jax.random.split(rng)
            seeds = jax.random.randint(sub, (2,), 0, 2 ** 31 - 1, dtype=jnp.int32)
            out_pad = spmm_block_sparse(
                self.adj_pad, self.cols, self.cnt, x_pad,
                tm=self.tm, tk=self.tk, Dp=Dp, Npad=Npad,
                max_blocks=self.max_blocks, total_blocks=self.total_blocks,
                x_resident=x_resident, adj_buffer_count=adj_bufs,
                vmem_limit_bytes=vmem_limit,
                edge_rate=edge_rate, mess_rate=mess_rate, seeds=seeds)
            embs.append(out_pad[:N, :D])
            x_pad = out_pad.astype(jnp.bfloat16)      # pure cast, no repack
        embs = jnp.stack(embs, axis=1)                # [N, n_hops+1, D]
        return embs[: self.n_users], embs[self.n_users:]


# --------------------------------- Demo ---------------------------------------

if __name__ == "__main__":
    n_users, n_items, embed_dim, n_hops = 192, 192, 128, 3
    n_nodes = n_users + n_items

    key = jax.random.PRNGKey(0)
    k_user, k_item, k_u, k_i = jax.random.split(key, 4)

    user_embed = jax.random.normal(k_user, (n_users, embed_dim), dtype=jnp.float32)
    item_embed = jax.random.normal(k_item, (n_items, embed_dim), dtype=jnp.float32)

    # Bipartite (user <-> item) interaction pattern, symmetrically normalized as
    # in LightGCN, stored dense.  The user-user / item-item blocks are empty so
    # the block-sparse schedule really skips adjacency blocks.
    n_edges = 4000
    u_idx = jax.random.randint(k_u, (n_edges,), 0, n_users)
    i_idx = jax.random.randint(k_i, (n_edges,), 0, n_items)
    A = jnp.zeros((n_nodes, n_nodes), jnp.float32)
    A = A.at[u_idx, n_users + i_idx].set(1.0)
    A = A.at[n_users + i_idx, u_idx].set(1.0)
    deg = jnp.maximum(A.sum(axis=1), 1.0)
    dinv = 1.0 / jnp.sqrt(deg)
    interact_mat = A * dinv[:, None] * dinv[None, :]

    # Auto-tiled model (exercises the VMEM-resident-x path at this size) and a
    # small-tile model that forces the streamed scalar-prefetch gather path.
    model = GraphConv(n_hops=n_hops, n_users=n_users, interact_mat=interact_mat)
    model_stream = GraphConv(n_hops=n_hops, n_users=n_users,
                             interact_mat=interact_mat,
                             tm=128, tk=128, x_resident=False)

    # Eval mode (no dropout): deterministic, checked against a dense reference
    # using the same numerics (bf16 adjacency, bf16 activations, f32 accumulate).
    all_embed = jnp.concatenate([user_embed, item_embed], axis=0)
    adj_eff = model.adj_pad[:n_nodes, :n_nodes].astype(jnp.float32)
    ref_embs = [all_embed]
    agg = all_embed
    for _ in range(n_hops):
        agg = jnp.dot(adj_eff, agg.astype(jnp.bfloat16).astype(jnp.float32),
                      precision=jax.lax.Precision.HIGHEST)
        ref_embs.append(agg)
    ref = jnp.stack(ref_embs, axis=1)

    for m in (model, model_stream):
        user_out, item_out = m(user_embed, item_embed,
                               mess_dropout=False, edge_dropout=False,
                               rng=jax.random.PRNGKey(1))
        jax.block_until_ready((user_out, item_out))
        assert user_out.shape == (n_users, n_hops + 1, embed_dim)
        assert item_out.shape == (n_items, n_hops + 1, embed_dim)
        # 1e-2 tolerance covers single-ulp bf16 re-rounding divergence between
        # the chained kernel hops and the chained reference hops.
        assert jnp.allclose(user_out, ref[:n_users], atol=1e-2, rtol=1e-2)
        assert jnp.allclose(item_out, ref[n_users:], atol=1e-2, rtol=1e-2)

    # Training mode (fused in-kernel edge dropout + mess dropout): stochastic,
    # check shapes / finiteness only.
    for m in (model, model_stream):
        tu, ti = m(user_embed, item_embed, mess_dropout=True, edge_dropout=True,
                   rng=jax.random.PRNGKey(2))
        jax.block_until_ready((tu, ti))
        assert tu.shape == (n_users, n_hops + 1, embed_dim)
        assert ti.shape == (n_items, n_hops + 1, embed_dim)
        assert bool(jnp.all(jnp.isfinite(tu))) and bool(jnp.all(jnp.isfinite(ti)))

    print("KERNEL_OK")
</pallas_src>

<mosaic_0001>
module attributes {stable_mosaic.version = 11 : i64} {
  func.func @_spmm_kernel(%arg0: i32, %arg1: i32, %arg2: memref<2xi32, #tpu.memory_space<smem>>, %arg3: memref<1xi32, #tpu.memory_space<smem>>, %arg4: memref<1xi32, #tpu.memory_space<smem>>, %arg5: memref<512x512xbf16, #tpu.memory_space<vmem>>, %arg6: memref<512x128xbf16, #tpu.memory_space<vmem>>, %arg7: memref<512x128xf32, #tpu.memory_space<vmem>>, %arg8: memref<512x128xf32, #tpu.memory_space<vmem>>) attributes {dimension_semantics = [#tpu.dimension_semantics<parallel>, #tpu.dimension_semantics<arbitrary>], iteration_bounds = array<i64: 1, 1>, scalar_prefetch = 3 : i64, scratch_operands = 1 : i64, tpu.core_type = #tpu.core_type<tc>, window_params = [{transform_indices = @transform_0, window_bounds = array<i64: 512, 512>}, {pipeline_mode = #tpu.pipeline_mode<synchronous>, transform_indices = @transform_1, window_bounds = array<i64: 512, 128>}, {transform_indices = @transform_2, window_bounds = array<i64: 512, 128>}]} {
    %c0_i32 = arith.constant 0 : i32
    %0 = arith.cmpi eq, %arg1, %c0_i32 : i32
    %1 = arith.extui %0 : i1 to i32
    %c0_i32_0 = arith.constant 0 : i32
    %2 = arith.cmpi ne, %1, %c0_i32_0 : i32
    scf.if %2 {
      %cst = arith.constant 0.000000e+00 : f32
      %11 = vector.broadcast %cst : f32 to vector<512x128xf32>
      %c0 = arith.constant 0 : index
      %c0_4 = arith.constant 0 : index
      %12 = vector.load %arg8[%c0, %c0_4] : memref<512x128xf32, #tpu.memory_space<vmem>>, vector<512x128xf32>
      tpu.vector_store %arg8[%c0, %c0_4], %11 {strides = array<i32>} : memref<512x128xf32, #tpu.memory_space<vmem>>, vector<512x128xf32>,
    } else {
    }
    %3 = arith.index_cast %arg0 : i32 to index
    %4 = memref.load %arg4[%3] : memref<1xi32, #tpu.memory_space<smem>>
    %5 = arith.cmpi slt, %arg1, %4 : i32
    %6 = arith.extui %5 : i1 to i32
    %c0_i32_1 = arith.constant 0 : i32
    %7 = arith.cmpi ne, %6, %c0_i32_1 : i32
    scf.if %7 {
      %c0 = arith.constant 0 : index
      %c0_4 = arith.constant 0 : index
      %11 = vector.load %arg5[%c0, %c0_4] : memref<512x512xbf16, #tpu.memory_space<vmem>>, vector<512x512xbf16>
      %c1_i32 = arith.constant 1 : i32
      %12 = arith.muli %arg0, %c1_i32 : i32
      %13 = arith.addi %12, %arg1 : i32
      %14 = arith.index_cast %13 : i32 to index
      %15 = memref.load %arg3[%14] : memref<1xi32, #tpu.memory_space<smem>>
      %c512_i32 = arith.constant 512 : i32
      %16 = arith.muli %15, %c512_i32 : i32
      %17 = arith.index_cast %16 : i32 to index
      %c0_5 = arith.constant 0 : index
      %18 = vector.load %arg6[%17, %c0_5] : memref<512x128xbf16, #tpu.memory_space<vmem>>, vector<512x128xbf16>
      %c0_6 = arith.constant 0 : index
      %c0_7 = arith.constant 0 : index
      %19 = vector.load %arg8[%c0_6, %c0_7] : memref<512x128xf32, #tpu.memory_space<vmem>>, vector<512x128xf32>
      %cst = arith.constant dense<0.000000e+00> : vector<512x128xf32>
      %20 = tpu.matmul %11, %18, %cst {dimension_numbers = #tpu.dot_dimension_numbers<[1], [0], [0], [1], [0, 0, 1, 1], [], []>} : vector<512x512xbf16>, vector<512x128xbf16>, vector<512x128xf32> -> vector<512x128xf32>
      %21 = arith.addf %19, %20 : vector<512x128xf32>
      %c0_8 = arith.constant 0 : index
      %c0_9 = arith.constant 0 : index
      %22 = vector.load %arg8[%c0_8, %c0_9] : memref<512x128xf32, #tpu.memory_space<vmem>>, vector<512x128xf32>
      tpu.vector_store %arg8[%c0_8, %c0_9], %21 {strides = array<i32>} : memref<512x128xf32, #tpu.memory_space<vmem>>, vector<512x128xf32>,
    } else {
    }
    %c0_i32_2 = arith.constant 0 : i32
    %8 = arith.cmpi eq, %arg1, %c0_i32_2 : i32
    %9 = arith.extui %8 : i1 to i32
    %c0_i32_3 = arith.constant 0 : i32
    %10 = arith.cmpi ne, %9, %c0_i32_3 : i32
    scf.if %10 {
      %c0 = arith.constant 0 : index
      %c0_4 = arith.constant 0 : index
      %11 = vector.load %arg8[%c0, %c0_4] : memref<512x128xf32, #tpu.memory_space<vmem>>, vector<512x128xf32>
      %c0_5 = arith.constant 0 : index
      %c0_6 = arith.constant 0 : index
      %12 = vector.load %arg7[%c0_5, %c0_6] : memref<512x128xf32, #tpu.memory_space<vmem>>, vector<512x128xf32>
      tpu.vector_store %arg7[%c0_5, %c0_6], %11 {strides = array<i32>} : memref<512x128xf32, #tpu.memory_space<vmem>>, vector<512x128xf32>,
    } else {
    }
    return
  }
  func.func @transform_0(%arg0: i32, %arg1: i32, %arg2: memref<2xi32, #tpu.memory_space<smem>>, %arg3: memref<1xi32, #tpu.memory_space<smem>>, %arg4: memref<1xi32, #tpu.memory_space<smem>>) -> (i32, i32) {
    %c1_i32 = arith.constant 1 : i32
    %0 = arith.muli %arg0, %c1_i32 : i32
    %1 = arith.addi %0, %arg1 : i32
    %2 = arith.index_cast %1 : i32 to index
    %3 = memref.load %arg3[%2] : memref<1xi32, #tpu.memory_space<smem>>
    %c0_i32 = arith.constant 0 : i32
    return %arg0, %3 : i32, i32
  }
  func.func @transform_1(%arg0: i32, %arg1: i32, %arg2: memref<2xi32, #tpu.memory_space<smem>>, %arg3: memref<1xi32, #tpu.memory_space<smem>>, %arg4: memref<1xi32, #tpu.memory_space<smem>>) -> (i32, i32) {
    %c0_i32 = arith.constant 0 : i32
    %c0_i32_0 = arith.constant 0 : i32
    %c0_i32_1 = arith.constant 0 : i32
    return %c0_i32, %c0_i32_0 : i32, i32
  }
  func.func @transform_2(%arg0: i32, %arg1: i32, %arg2: memref<2xi32, #tpu.memory_space<smem>>, %arg3: memref<1xi32, #tpu.memory_space<smem>>, %arg4: memref<1xi32, #tpu.memory_space<smem>>) -> (i32, i32) {
    %c0_i32 = arith.constant 0 : i32
    %c0_i32_0 = arith.constant 0 : i32
    return %arg0, %c0_i32 : i32, i32
  }
}

</mosaic_0001>

<bundles_post_ra>
// kernel: tpu_custom_call.1
= control target key start
LH: loop header
LB: loop body
LE: loop exit
PB: predicated region body
PF: predicated region fallthrough
CT: control target
= control target key end

     0   :  { %s2799_s0 = inlined_call_operand.vmem [shape: s32[2], index: 0, kind: input, shape index: {}]   ;;  %s2800_s1 = inlined_call_operand.<no memory space> [shape: s32[1], index: 1, kind: input, shape index: {}]   ;;  %s2801_s2 = inlined_call_operand.<no memory space> [shape: s32[1], index: 2, kind: input, shape index: {}]   ;;  %s2802_s3 = inlined_call_operand.hbm [shape: bf16[512,512], index: 3, kind: input, shape index: {}]   ;;  %s2803_s4 = inlined_call_operand.hbm [shape: bf16[512,128], index: 4, kind: input, shape index: {}]   ;;  %s2804_s5 = inlined_call_operand.hbm [shape: f32[512,128], index: 5, kind: output, shape index: {}]  }
   0x1   :  { %s10_s20 = sshll.u32 %s2799_s0, 4  ;;  %14 = sst [smem:[#allocation5]] %s2800_s1  ;;  %s11_s20 = int_to_ptr.vmem [resolvable:$true] %s10_s20 }
   0x2   :  { %s2490_s23 = scalar_lea.vmem %s11_s20, 16  ;;  %p2495_p1 = scmp.lt.s32.totalorder %s11_s20, %s11_s20 }
   0x3   :  { %p2491_p0 = scmp.ne.s32.totalorder %s11_s20, %s2490_s23  ;;  %p2496_p2 = scmp.lt.s32.totalorder %s2490_s23, %s2490_s23 }
   0x5   :  { %p2497_p3 = por %p2496_p2, %p2495_p1 }
   0x7   :  { %p2498_p4 = pnand %p2497_p3, %p2491_p0 }
   0x9   :  { %2501 = shalt.err (!%p2498_p4)  }
   0xa   :  { %s2578_s24 = smov [#allocation4]  }
   0xb   :  { %13 = dma.vmem_to_smem %s11_s20, 16, %s2578_s24, [#allocation3] }
   0xc   :  { %2570 = dma.done.wait [#allocation3], 16 }
   0xd   :  { %2571 = vsyncadd [#allocation3], 4294967280 }
   0xe   :  { %17 = sfence }
   0xf   :  { %18 = vsyncpa [#allocation8], 0 }
  0x10   :  { %19 = vsyncpa [#allocation11], 0 }
  0x11   :  { %20 = vsyncpa [#allocation9], 0  ;;  %s24_s0 = sld [smem:[#allocation5]]  ;;  %s2579_s25 = smov [#allocation7]  }
  0x12   :  { %s31_s26 = sshll.u32 %s2579_s25, 4  ;;  %s2580_s1 = smov [#allocation10]   ;;  %s32_s26 = int_to_ptr.vmem [resolvable:$true] %s31_s26 }
  0x13   :  { %s43_s27 = sshll.u32 %s2580_s1, 4  ;;  %s2504_s10 = scalar_lea.hbm %s2802_s3, 16384  ;;  %s2626_s27 = int_to_ptr.vmem [resolvable:$true] %s43_s27 }
  0x17   :  { %s2253_s28 = sshll.u32 %s24_s0, 8 }
  0x18   :  { %s30_s6 = scalar_lea.hbm %s2802_s3, %s2253_s28 }
  0x19   :  { %s2502_s7 = scalar_lea.hbm %s30_s6, 16384  ;;  %p2505_p6 = scmp.lt.u32.totalorder %s30_s6, %s2802_s3 }
  0x1a   :  { %p2503_p5 = scmp.ne.s32.totalorder %s30_s6, %s2502_s7  ;;  %p2506_p7 = scmp.lt.u32.totalorder %s2504_s10, %s2502_s7 }
  0x1b   :  { %p2508_p9 = scmp.lt.u32.totalorder %s2502_s7, %s30_s6 }
  0x1c   :  { %p2507_p8 = por %p2506_p7, %p2505_p6 }
  0x1e   :  { %p2509_p10 = por %p2508_p9, %p2507_p8 }
  0x20   :  { %p2510_p11 = pnand %p2509_p10, %p2503_p5 }
  0x22   :  { %2513 = shalt.err (!%p2510_p11)
}
  0x23   :  { %s2514_s13 = scalar_lea.vmem %s32_s26, 16384  ;;  %p2519_p13 = scmp.lt.s32.totalorder %s32_s26, %s32_s26 }
  0x24   :  { %p2515_p12 = scmp.ne.s32.totalorder %s32_s26, %s2514_s13  ;;  %p2520_p0 = scmp.lt.s32.totalorder %s2514_s13, %s2514_s13 }
  0x26   :  { %p2521_p1 = por %p2520_p0, %p2519_p13 }
  0x28   :  { %p2522_p2 = pnand %p2521_p1, %p2515_p12 }
  0x2a   :  { %2525 = shalt.err (!%p2522_p2)
}
  0x2b   :  { %s2581_s14 = smov 256   ;;  %s2582_s15 = smov 16  }
  0x2c   :  { %37 = dma.hbm_to_vmem [thread:$0]  %s30_s6, 16384, %s32_s26, [#allocation8], %s2581_s14, %s2581_s14, %s2582_s15  }
  0x2d   :  { %s2526_s3 = scalar_lea.hbm %s2803_s4, 4096 }
  0x2e   :  { %p2527_p3 = scmp.ne.s32.totalorder %s2803_s4, %s2526_s3  ;;  %p2530_p4 = scmp.lt.u32.totalorder %s2526_s3, %s2803_s4 }
  0x30   :  { %p2532_p5 = pnand %p2530_p4, %p2527_p3 }
  0x32   :  { %2535 = shalt.err (!%p2532_p5)
}
  0x33   :  { %s2536_s22 = scalar_lea.vmem %s2626_s27, 4096  ;;  %p2541_p7 = scmp.lt.s32.totalorder %s2626_s27, %s2626_s27 }
  0x34   :  { %p2537_p6 = scmp.ne.s32.totalorder %s2626_s27, %s2536_s22  ;;  %p2542_p8 = scmp.lt.s32.totalorder %s2536_s22, %s2536_s22 }
  0x36   :  { %p2543_p9 = por %p2542_p8, %p2541_p7 }
  0x38   :  { %p2544_p10 = pnand %p2543_p9, %p2537_p6 }
  0x3a   :  { %2547 = shalt.err (!%p2544_p10)
}
  0x3b   :  { %s2583_s23 = smov 64   ;;  %s2584_s24 = smov 4  }
  0x3c   :  { %49 = dma.hbm_to_vmem [thread:$0]  %s2803_s4, 4096, %s2626_s27, [#allocation11], %s2583_s23, %s2583_s23, %s2584_s24  }
  0x3d   :  { %2572 = dma.done.wait [#allocation8], 16384  }
  0x3e   :  { %2573 = vsyncadd [#allocation8], 4294950912 }
  0x3f   :  { %2574 = dma.done.wait [#allocation11], 4096  }
  0x40   :  { %2575 = vsyncadd [#allocation11], 4294963200  ;;  %v2585_v0 = vmov 0.0   ;;  %p2090_p11 = scmp.le.s32.totalorder %s2801_s2, 0 }
  0x41   :  { %64 = vst [vmem:[#allocation2] sm:$0xff] %v2585_v0  ;;  %65 = vst [vmem:[#allocation2 + $0x8] sm:$0xff] %v2585_v0  ;;  %s262_s1 = sld [smem:[#allocation5]] (!%p2090_p11)  ;;  %v2586_v1 = vmov (!%p2090_p11), 0   ;;  %v2300_v2 = vld [vmem:[#allocation7 + $0x4] ss:$16 sps:$4 sm:$0xff] (!%p2090_p11)  }
  0x42   :  { %66 = vst [vmem:[#allocation2 + $0x10] sm:$0xff] %v2585_v0  ;;  %67 = vst [vmem:[#allocation2 + $0x18] sm:$0xff] %v2585_v0  ;;  %1228 = vmatprep.subr.bf16.mxu0 (!%p2090_p11), %v2586_v1  ;;  %1517 = vmatprep.subr.bf16.mxu1 (!%p2090_p11), %v2586_v1  ;;  %v2303_v3 = vld [vmem:[#allocation7 + $0xc] ss:$16 sps:$4 sm:$0xff] (!%p2090_p11)   ;;  %v2298_v36 = vld [vmem:[#allocation7] ss:$16 sps:$4 sm:$0xff] (!%p2090_p11)  }
  0x43   :  { %68 = vst [vmem:[#allocation2 + $0x20] sm:$0xff] %v2585_v0  ;;  %69 = vst [vmem:[#allocation2 + $0x28] sm:$0xff] %v2585_v0  ;;  %1260 = vmatprep.mubr.bf16.mxu0 (!%p2090_p11), %v2300_v2  ;;  %1549 = vmatprep.mubr.bf16.mxu1 (!%p2090_p11), %v2303_v3  ;;  %v2301_v37 = vld [vmem:[#allocation7 + $0x8] ss:$16 sps:$4 sm:$0xff] (!%p2090_p11)   ;;  %v2304_v38 = vld [vmem:[#allocation7 + $0x24] ss:$16 sps:$4 sm:$0xff] (!%p2090_p11)  }
  0x44   :  { %70 = vst [vmem:[#allocation2 + $0x30] sm:$0xff] %v2585_v0  ;;  %71 = vst [vmem:[#allocation2 + $0x38] sm:$0xff] %v2585_v0  ;;  %v2306_v39 = vld [vmem:[#allocation7 + $0x2c] ss:$16 sps:$4 sm:$0xff] (!%p2090_p11)   ;;  %v2308_v40 = vld [vmem:[#allocation7 + $0x20] ss:$16 sps:$4 sm:$0xff] (!%p2090_p11)  }
  0x45   :  { %72 = vst [vmem:[#allocation2 + $0x40] sm:$0xff] %v2585_v0  ;;  %73 = vst [vmem:[#allocation2 + $0x48] sm:$0xff] %v2585_v0  ;;  %v2309_v41 = vld [vmem:[#allocation7 + $0x28] ss:$16 sps:$4 sm:$0xff] (!%p2090_p11)   ;;  %v2310_v42 = vld [vmem:[#allocation7 + $0x44] ss:$16 sps:$4 sm:$0xff] (!%p2090_p11)  }
  0x46   :  { %74 = vst [vmem:[#allocation2 + $0x50] sm:$0xff] %v2585_v0  ;;  %75 = vst [vmem:[#allocation2 + $0x58] sm:$0xff] %v2585_v0  ;;  %v2312_v43 = vld [vmem:[#allocation7 + $0x4c] ss:$16 sps:$4 sm:$0xff] (!%p2090_p11)   ;;  %v2314_v44 = vld [vmem:[#allocation7 + $0x40] ss:$16 sps:$4 sm:$0xff] (!%p2090_p11)  }
  0x47   :  { %76 = vst [vmem:[#allocation2 + $0x60] sm:$0xff] %v2585_v0  ;;  %77 = vst [vmem:[#allocation2 + $0x68] sm:$0xff] %v2585_v0  ;;  %s2091_s27 = sshll.u32 (!%p2090_p11), %s262_s1, 9  ;;  %v2315_v45 = vld [vmem:[#allocation7 + $0x48] ss:$16 sps:$4 sm:$0xff] (!%p2090_p11)  }
  0x48   :  { %78 = vst [vmem:[#allocation2 + $0x70] sm:$0xff] %v2585_v0  ;;  %79 = vst [vmem:[#allocation2 + $0x78] sm:$0xff] %v2585_v0  ;;  %s264_s28 = sshra.s32 (!%p2090_p11), %s2091_s27, 3  ;;  %v2316_v46 = vld [vmem:[#allocation7 + $0x64] ss:$16 sps:$4 sm:$0xff] (!%p2090_p11)  }
  0x49   :  { %80 = vst [vmem:[#allocation2 + $0x80] sm:$0xff] %v2585_v0  ;;  %81 = vst [vmem:[#allocation2 + $0x88] sm:$0xff] %v2585_v0  ;;  %s2092_s29 = sshll.u32 (!%p2090_p11), %s264_s28, 2  ;;  %v2318_v47 = vld [vmem:[#allocation7 + $0x6c] ss:$16 sps:$4 sm:$0xff] (!%p2090_p11)  }
  0x4a   :  { %82 = vst [vmem:[#allocation2 + $0x90] sm:$0xff] %v2585_v0  ;;  %83 = vst [vmem:[#allocation2 + $0x98] sm:$0xff] %v2585_v0  ;;  %s2723_s30 = scalar_lea.vmem (!%p2090_p11), [#allocation10], %s2092_s29  ;;  %v2320_v48 = vld [vmem:[#allocation7 + $0x60] ss:$16 sps:$4 sm:$0xff] (!%p2090_p11)  }
  0x4b   :  { %84 = vst [vmem:[#allocation2 + $0xa0] sm:$0xff] %v2585_v0  ;;  %85 = vst [vmem:[#allocation2 + $0xa8] sm:$0xff] %v2585_v0  ;;  %v2266_v4 = vld [vmem:[%s2723_s30] sm:$0xff] (!%p2090_p11)   ;;  %v2268_v6 = vld [vmem:[%s2723_s30 + $0x8] sm:$0xff] (!%p2090_p11)  }
  0x4c   :  { %86 = vst [vmem:[#allocation2 + $0xb0] sm:$0xff] %v2585_v0  ;;  %87 = vst [vmem:[#allocation2 + $0xb8] sm:$0xff] %v2585_v0  ;;  %v2267_v5 = vld [vmem:[%s2723_s30 + $0x80] sm:$0xff] (!%p2090_p11)   ;;  %1229 = vmatpush1.bf16.msra.mxu0 (!%p2090_p11), %v2266_v4  ;;  %v2269_v7 = vld [vmem:[%s2723_s30 + $0x88] sm:$0xff] (!%p2090_p11)  }
  0x4d   :  { %88 = vst [vmem:[#allocation2 + $0xc0] sm:$0xff] %v2585_v0  ;;  %89 = vst [vmem:[#allocation2 + $0xc8] sm:$0xff] %v2585_v0  ;;  %1518 = vmatpush1.bf16.msra.mxu1 (!%p2090_p11), %v2267_v5  ;;  %1230 = vmatprep.subr.bf16.mxu0 (!%p2090_p11), %v2586_v1  ;;  %v2270_v8 = vld [vmem:[%s2723_s30 + $0x10] sm:$0xff] (!%p2090_p11)   ;;  %v2272_v10 = vld [vmem:[%s2723_s30 + $0x18] sm:$0xff] (!%p2090_p11)  }
  0x4e   :  { %90 = vst [vmem:[#allocation2 + $0xd0] sm:$0xff] %v2585_v0  ;;  %91 = vst [vmem:[#allocation2 + $0xd8] sm:$0xff] %v2585_v0  ;;  %1519 = vmatprep.subr.bf16.mxu1 (!%p2090_p11), %v2586_v1  ;;  %v2271_v9 = vld [vmem:[%s2723_s30 + $0x90] sm:$0xff] (!%p2090_p11)   ;;  %v2273_v11 = vld [vmem:[%s2723_s30 + $0x98] sm:$0xff] (!%p2090_p11)  }
  0x4f   :  { %92 = vst [vmem:[#allocation2 + $0xe0] sm:$0xff] %v2585_v0  ;;  %93 = vst [vmem:[#allocation2 + $0xe8] sm:$0xff] %v2585_v0  ;;  %v2274_v12 = vld [vmem:[%s2723_s30 + $0x20] sm:$0xff] (!%p2090_p11)   ;;  %v2276_v14 = vld [vmem:[%s2723_s30 + $0x28] sm:$0xff] (!%p2090_p11)  }
  0x50   :  { %94 = vst [vmem:[#allocation2 + $0xf0] sm:$0xff] %v2585_v0  ;;  %95 = vst [vmem:[#allocation2 + $0xf8] sm:$0xff] %v2585_v0  ;;  %1231 = vmatpush1.bf16.msra.mxu0 (!%p2090_p11), %v2268_v6  ;;  %v2275_v13 = vld [vmem:[%s2723_s30 + $0xa0] sm:$0xff] (!%p2090_p11)   ;;  %v2277_v15 = vld [vmem:[%s2723_s30 + $0xa8] sm:$0xff] (!%p2090_p11)  }
  0x51   :  { %96 = vst [vmem:[#allocation2 + $0x100] sm:$0xff] %v2585_v0  ;;  %97 = vst [vmem:[#allocation2 + $0x108] sm:$0xff] %v2585_v0  ;;  %1520 = vmatpush1.bf16.msra.mxu1 (!%p2090_p11), %v2269_v7  ;;  %1232 = vmatprep.subr.bf16.mxu0 (!%p2090_p11), %v2586_v1  ;;  %v2278_v16 = vld [vmem:[%s2723_s30 + $0x30] sm:$0xff] (!%p2090_p11)   ;;  %v2280_v18 = vld [vmem:[%s2723_s30 + $0x38] sm:$0xff] (!%p2090_p11)  }
  0x52   :  { %98 = vst [vmem:[#allocation2 + $0x110] sm:$0xff] %v2585_v0  ;;  %99 = vst [vmem:[#allocation2 + $0x118] sm:$0xff] %v2585_v0  ;;  %1521 = vmatprep.subr.bf16.mxu1 (!%p2090_p11), %v2586_v1  ;;  %v2279_v17 = vld [vmem:[%s2723_s30 + $0xb0] sm:$0xff] (!%p2090_p11)   ;;  %v2281_v19 = vld [vmem:[%s2723_s30 + $0xb8] sm:$0xff] (!%p2090_p11)  }
  0x53   :  { %100 = vst [vmem:[#allocation2 + $0x120] sm:$0xff] %v2585_v0  ;;  %101 = vst [vmem:[#allocation2 + $0x128] sm:$0xff] %v2585_v0  ;;  %v2282_v20 = vld [vmem:[%s2723_s30 + $0x40] sm:$0xff] (!%p2090_p11)   ;;  %v2284_v22 = vld [vmem:[%s2723_s30 + $0x48] sm:$0xff] (!%p2090_p11)  }
  0x54   :  { %102 = vst [vmem:[#allocation2 + $0x130] sm:$0xff] %v2585_v0  ;;  %103 = vst [vmem:[#allocation2 + $0x138] sm:$0xff] %v2585_v0  ;;  %1233 = vmatpush1.bf16.msra.mxu0 (!%p2090_p11), %v2270_v8  ;;  %v2283_v21 = vld [vmem:[%s2723_s30 + $0xc0] sm:$0xff] (!%p2090_p11)   ;;  %v2285_v23 = vld [vmem:[%s2723_s30 + $0xc8] sm:$0xff] (!%p2090_p11)  }
  0x55   :  { %104 = vst [vmem:[#allocation2 + $0x140] sm:$0xff] %v2585_v0  ;;  %105 = vst [vmem:[#allocation2 + $0x148] sm:$0xff] %v2585_v0  ;;  %1522 = vmatpush1.bf16.msra.mxu1 (!%p2090_p11), %v2271_v9  ;;  %1234 = vmatprep.subr.bf16.mxu0 (!%p2090_p11), %v2586_v1  ;;  %v2286_v24 = vld [vmem:[%s2723_s30 + $0x50] sm:$0xff] (!%p2090_p11)   ;;  %v2288_v26 = vld [vmem:[%s2723_s30 + $0x58] sm:$0xff] (!%p2090_p11)  }
  0x56   :  { %106 = vst [vmem:[#allocation2 + $0x150] sm:$0xff] %v2585_v0  ;;  %107 = vst [vmem:[#allocation2 + $0x158] sm:$0xff] %v2585_v0  ;;  %1523 = vmatprep.subr.bf16.mxu1 (!%p2090_p11), %v2586_v1  ;;  %v2287_v25 = vld [vmem:[%s2723_s30 + $0xd0] sm:$0xff] (!%p2090_p11)   ;;  %v2289_v27 = vld [vmem:[%s2723_s30 + $0xd8] sm:$0xff] (!%p2090_p11)  }
  0x57   :  { %108 = vst [vmem:[#allocation2 + $0x160] sm:$0xff] %v2585_v0  ;;  %109 = vst [vmem:[#allocation2 + $0x168] sm:$0xff] %v2585_v0  ;;  %v2290_v28 = vld [vmem:[%s2723_s30 + $0x60] sm:$0xff] (!%p2090_p11)   ;;  %v2292_v30 = vld [vmem:[%s2723_s30 + $0x68] sm:$0xff] (!%p2090_p11)  }
  0x58   :  { %110 = vst [vmem:[#allocation2 + $0x170] sm:$0xff] %v2585_v0  ;;  %111 = vst [vmem:[#allocation2 + $0x178] sm:$0xff] %v2585_v0  ;;  %1235 = vmatpush1.bf16.msra.mxu0 (!%p2090_p11), %v2272_v10  ;;  %v2291_v29 = vld [vmem:[%s2723_s30 + $0xe0] sm:$0xff] (!%p2090_p11)   ;;  %v2293_v31 = vld [vmem:[%s2723_s30 + $0xe8] sm:$0xff] (!%p2090_p11)  }
  0x59   :  { %112 = vst [vmem:[#allocation2 + $0x180] sm:$0xff] %v2585_v0  ;;  %113 = vst [vmem:[#allocation2 + $0x188] sm:$0xff] %v2585_v0  ;;  %1524 = vmatpush1.bf16.msra.mxu1 (!%p2090_p11), %v2273_v11  ;;  %1236 = vmatprep.subr.bf16.mxu0 (!%p2090_p11), %v2586_v1  ;;  %v2294_v32 = vld [vmem:[%s2723_s30 + $0x70] sm:$0xff] (!%p2090_p11)   ;;  %v2296_v34 = vld [vmem:[%s2723_s30 + $0x78] sm:$0xff] (!%p2090_p11)  }
  0x5a   :  { %114 = vst [vmem:[#allocation2 + $0x190] sm:$0xff] %v2585_v0  ;;  %115 = vst [vmem:[#allocation2 + $0x198] sm:$0xff] %v2585_v0  ;;  %132 = sbr.rel (%p2090_p11) target bundleno = 607 (0x25f), region = 25  ;;  %1525 = vmatprep.subr.bf16.mxu1 (!%p2090_p11), %v2586_v1  ;;  %v2295_v33 = vld [vmem:[%s2723_s30 + $0xf0] sm:$0xff] (!%p2090_p11)   ;;  %v2297_v35 = vld [vmem:[%s2723_s30 + $0xf8] sm:$0xff] (!%p2090_p11)  }
  0x5b   :  { %116 = vst [vmem:[#allocation2 + $0x1a0] sm:$0xff] %v2585_v0  ;;  %117 = vst [vmem:[#allocation2 + $0x1a8] sm:$0xff] %v2585_v0  ;;  %v2321_v49 = vld [vmem:[#allocation7 + $0x68] ss:$16 sps:$4 sm:$0xff] (!%p2090_p11)   ;;  %v2322_v50 = vld [vmem:[#allocation7 + $0x84] ss:$16 sps:$4 sm:$0xff] (!%p2090_p11)  }
  0x5c   :  { %118 = vst [vmem:[#allocation2 + $0x1b0] sm:$0xff] %v2585_v0  ;;  %119 = vst [vmem:[#allocation2 + $0x1b8] sm:$0xff] %v2585_v0  ;;  %1237 = vmatpush1.bf16.msra.mxu0 (!%p2090_p11), %v2274_v12  ;;  %v2324_v51 = vld [vmem:[#allocation7 + $0x8c] ss:$16 sps:$4 sm:$0xff] (!%p2090_p11)   ;;  %v2326_v52 = vld [vmem:[#allocation7 + $0x80] ss:$16 sps:$4 sm:$0xff] (!%p2090_p11)  }
  0x5d   :  { %120 = vst [vmem:[#allocation2 + $0x1c0] sm:$0xff] %v2585_v0  ;;  %121 = vst [vmem:[#allocation2 + $0x1c8] sm:$0xff] %v2585_v0  ;;  %1526 = vmatpush1.bf16.msra.mxu1 (!%p2090_p11), %v2275_v13  ;;  %1238 = vmatprep.subr.bf16.mxu0 (!%p2090_p11), %v2586_v1  ;;  %v2327_v53 = vld [vmem:[#allocation7 + $0x88] ss:$16 sps:$4 sm:$0xff] (!%p2090_p11)   ;;  %v2328_v54 = vld [vmem:[#allocation7 + $0xa4] ss:$16 sps:$4 sm:$0xff] (!%p2090_p11)  }
  0x5e   :  { %122 = vst [vmem:[#allocation2 + $0x1d0] sm:$0xff] %v2585_v0  ;;  %123 = vst [vmem:[#allocation2 + $0x1d8] sm:$0xff] %v2585_v0  ;;  %1527 = vmatprep.subr.bf16.mxu1 (!%p2090_p11), %v2586_v1  ;;  %v2330_v55 = vld [vmem:[#allocation7 + $0xac] ss:$16 sps:$4 sm:$0xff] (!%p2090_p11)   ;;  %v2332_v56 = vld [vmem:[#allocation7 + $0xa0] ss:$16 sps:$4 sm:$0xff] (!%p2090_p11)  }
  0x5f   :  { %124 = vst [vmem:[#allocation2 + $0x1e0] sm:$0xff] %v2585_v0  ;;  %125 = vst [vmem:[#allocation2 + $0x1e8] sm:$0xff] %v2585_v0  ;;  %v2333_v57 = vld [vmem:[#allocation7 + $0xa8] ss:$16 sps:$4 sm:$0xff] (!%p2090_p11)   ;;  %v2334_v58 = vld [vmem:[#allocation7 + $0xc4] ss:$16 sps:$4 sm:$0xff] (!%p2090_p11)  }
  0x60   :  { %126 = vst [vmem:[#allocation2 + $0x1f0] sm:$0xff] %v2585_v0  ;;  %127 = vst [vmem:[#allocation2 + $0x1f8] sm:$0xff] %v2585_v0  ;;  %1239 = vmatpush1.bf16.msra.mxu0 (!%p2090_p11), %v2276_v14  ;;  %v2336_v59 = vld [vmem:[#allocation7 + $0xcc] ss:$16 sps:$4 sm:$0xff] (!%p2090_p11)   ;;  %v2338_v60 = vld [vmem:[#allocation7 + $0xc0] ss:$16 sps:$4 sm:$0xff] (!%p2090_p11)  }
  0x61   :  { %1528 = vmatpush1.bf16.msra.mxu1 %v2277_v15  ;;  %1240 = vmatprep.subr.bf16.mxu0 %v2586_v1  ;;  %v2339_v61 = vld [vmem:[#allocation7 + $0xc8] ss:$16 sps:$4 sm:$0xff]   ;;  %v2340_v62 = vld [vmem:[#allocation7 + $0xe4] ss:$16 sps:$4 sm:$0xff]   ;;  %v2342_v63 = vld [vmem:[#allocation7 + $0xec] ss:$16 sps:$4 sm:$0xff]  }
  0x62   :  { %1529 = vmatprep.subr.bf16.mxu1 %v2586_v1  ;;  %v2344_v0 = vld [vmem:[#allocation7 + $0xe0] ss:$16 sps:$4 sm:$0xff]   ;;  %v2346_v2 = vld [vmem:[#allocation7 + $0x104] ss:$16 sps:$4 sm:$0xff]   ;;  %v2348_v3 = vld [vmem:[#allocation7 + $0x10c] ss:$16 sps:$4 sm:$0xff]  }
  0x63   :  { %v2350_v4 = vld [vmem:[#allocation7 + $0x100] ss:$16 sps:$4 sm:$0xff]   ;;  %v2351_v5 = vld [vmem:[#allocation7 + $0x108] ss:$16 sps:$4 sm:$0xff]   ;;  %v2352_v6 = vld [vmem:[#allocation7 + $0x124] ss:$16 sps:$4 sm:$0xff]  }
  0x64   :  { %1241 = vmatpush1.bf16.msra.mxu0 %v2278_v16  ;;  %v2354_v7 = vld [vmem:[#allocation7 + $0x12c] ss:$16 sps:$4 sm:$0xff]   ;;  %v2356_v8 = vld [vmem:[#allocation7 + $0x120] ss:$16 sps:$4 sm:$0xff]   ;;  %v2357_v9 = vld [vmem:[#allocation7 + $0x128] ss:$16 sps:$4 sm:$0xff]  }
  0x65   :  { %1530 = vmatpush1.bf16.msra.mxu1 %v2279_v17  ;;  %1242 = vmatprep.subr.bf16.mxu0 %v2586_v1  ;;  %v2358_v10 = vld [vmem:[#allocation7 + $0x144] ss:$16 sps:$4 sm:$0xff]   ;;  %v2360_v11 = vld [vmem:[#allocation7 + $0x14c] ss:$16 sps:$4 sm:$0xff]   ;;  %v2362_v12 = vld [vmem:[#allocation7 + $0x140] ss:$16 sps:$4 sm:$0xff]  }
  0x66   :  { %1531 = vmatprep.subr.bf16.mxu1 %v2586_v1  ;;  %v2363_v13 = vld [vmem:[#allocation7 + $0x148] ss:$16 sps:$4 sm:$0xff]   ;;  %v2364_v14 = vld [vmem:[#allocation7 + $0x164] ss:$16 sps:$4 sm:$0xff]   ;;  %v2366_v15 = vld [vmem:[#allocation7 + $0x16c] ss:$16 sps:$4 sm:$0xff]  }
  0x67   :  { %v2368_v16 = vld [vmem:[#allocation7 + $0x160] ss:$16 sps:$4 sm:$0xff]   ;;  %v2369_v17 = vld [vmem:[#allocation7 + $0x168] ss:$16 sps:$4 sm:$0xff]  }
  0x68   :  { %1243 = vmatpush1.bf16.msra.mxu0 %v2280_v18  ;;  %v2370_v18 = vld [vmem:[#allocation7 + $0x184] ss:$16 sps:$4 sm:$0xff]  }
  0x69   :  { %1532 = vmatpush1.bf16.msra.mxu1 %v2281_v19  ;;  %1244 = vmatprep.subr.bf16.mxu0 %v2586_v1  ;;  %v2372_v19 = vld [vmem:[#allocation7 + $0x18c] ss:$16 sps:$4 sm:$0xff]  }
  0x6a   :  { %1533 = vmatprep.subr.bf16.mxu1 %v2586_v1 }
  0x6c   :  { %1245 = vmatpush1.bf16.msra.mxu0 %v2282_v20  ;;  %v2374_v20 = vld [vmem:[#allocation7 + $0x180] ss:$16 sps:$4 sm:$0xff]  }
  0x6d   :  { %1534 = vmatpush1.bf16.msra.mxu1 %v2283_v21  ;;  %1246 = vmatprep.subr.bf16.mxu0 %v2586_v1  ;;  %v2375_v21 = vld [vmem:[#allocation7 + $0x188] ss:$16 sps:$4 sm:$0xff]  }
  0x6e   :  { %1535 = vmatprep.subr.bf16.mxu1 %v2586_v1 }
  0x70   :  { %1247 = vmatpush1.bf16.msra.mxu0 %v2284_v22  ;;  %v2376_v22 = vld [vmem:[#allocation7 + $0x1a4] ss:$16 sps:$4 sm:$0xff]  }
  0x71   :  { %1536 = vmatpush1.bf16.msra.mxu1 %v2285_v23  ;;  %1248 = vmatprep.subr.bf16.mxu0 %v2586_v1  ;;  %v2378_v23 = vld [vmem:[#allocation7 + $0x1ac] ss:$16 sps:$4 sm:$0xff]  }
  0x72   :  { %1537 = vmatprep.subr.bf16.mxu1 %v2586_v1 }
  0x74   :  { %1249 = vmatpush1.bf16.msra.mxu0 %v2286_v24  ;;  %v2380_v24 = vld [vmem:[#allocation7 + $0x1a0] ss:$16 sps:$4 sm:$0xff]  }
  0x75   :  { %1538 = vmatpush1.bf16.msra.mxu1 %v2287_v25  ;;  %1250 = vmatprep.subr.bf16.mxu0 %v2586_v1  ;;  %v2381_v25 = vld [vmem:[#allocation7 + $0x1a8] ss:$16 sps:$4 sm:$0xff]  }
  0x76   :  { %1539 = vmatprep.subr.bf16.mxu1 %v2586_v1 }
  0x78   :  { %1251 = vmatpush1.bf16.msra.mxu0 %v2288_v26  ;;  %v2382_v26 = vld [vmem:[#allocation7 + $0x1c4] ss:$16 sps:$4 sm:$0xff]  }
  0x79   :  { %1540 = vmatpush1.bf16.msra.mxu1 %v2289_v27  ;;  %1252 = vmatprep.subr.bf16.mxu0 %v2586_v1  ;;  %v2384_v27 = vld [vmem:[#allocation7 + $0x1cc] ss:$16 sps:$4 sm:$0xff]  }
  0x7a   :  { %1541 = vmatprep.subr.bf16.mxu1 %v2586_v1 }
  0x7c   :  { %1253 = vmatpush1.bf16.msra.mxu0 %v2290_v28  ;;  %v2386_v28 = vld [vmem:[#allocation7 + $0x1c0] ss:$16 sps:$4 sm:$0xff]  }
  0x7d   :  { %1542 = vmatpush1.bf16.msra.mxu1 %v2291_v29  ;;  %1254 = vmatprep.subr.bf16.mxu0 %v2586_v1  ;;  %v2387_v29 = vld [vmem:[#allocation7 + $0x1c8] ss:$16 sps:$4 sm:$0xff]  }
  0x7e   :  { %1543 = vmatprep.subr.bf16.mxu1 %v2586_v1 }
  0x80   :  { %1255 = vmatpush1.bf16.msra.mxu0 %v2292_v30  ;;  %v2388_v30 = vld [vmem:[#allocation7 + $0x1e4] ss:$16 sps:$4 sm:$0xff]  }
  0x81   :  { %1544 = vmatpush1.bf16.msra.mxu1 %v2293_v31  ;;  %1256 = vmatprep.subr.bf16.mxu0 %v2586_v1  ;;  %v2390_v31 = vld [vmem:[#allocation7 + $0x1ec] ss:$16 sps:$4 sm:$0xff]  }
  0x82   :  { %1545 = vmatprep.subr.bf16.mxu1 %v2586_v1 }
  0x84   :  { %1257 = vmatpush1.bf16.msra.mxu0 %v2294_v32  ;;  %v2392_v32 = vld [vmem:[#allocation7 + $0x1e0] ss:$16 sps:$4 sm:$0xff]  }
  0x85   :  { %1546 = vmatpush1.bf16.msra.mxu1 %v2295_v33  ;;  %1258 = vmatprep.subr.bf16.mxu0 %v2586_v1  ;;  %v2393_v33 = vld [vmem:[#allocation7 + $0x1e8] ss:$16 sps:$4 sm:$0xff]  }
  0x86   :  { %1547 = vmatprep.subr.bf16.mxu1 %v2586_v1  ;;  %v2345_v1 = vld [vmem:[#allocation7 + $0xe8] ss:$16 sps:$4 sm:$0xff]  }
  0x88   :  { %1259 = vmatpush1.bf16.msra.mxu0 %v2296_v34  ;;  %v2394_v34 = vld [vmem:[#allocation7 + $0x204] ss:$16 sps:$4 sm:$0xff]  }
  0x89   :  { %1548 = vmatpush1.bf16.msra.mxu1 %v2297_v35  ;;  %v2396_v35 = vld [vmem:[#allocation7 + $0x20c] ss:$16 sps:$4 sm:$0xff]  }
  0x8b   :  { %1261 = vmatmul.mubr.bf16.vlgmr.msra.gmra.mrb[0].mxu0 %v2298_v36  ;;  %v2398_v36 = vld [vmem:[#allocation7 + $0x200] ss:$16 sps:$4 sm:$0xff]  }
  0x8c   :  { %1550 = vmatmul.mubr.bf16.vlgmr.msra.gmra.mrb[0].mxu1 %v2301_v37  ;;  %1268 = vmatprep.mubr.bf16.mxu0 %v2304_v38  ;;  %v2399_v37 = vld [vmem:[#allocation7 + $0x208] ss:$16 sps:$4 sm:$0xff]   ;;  %v2400_v38 = vld [vmem:[#allocation7 + $0x224] ss:$16 sps:$4 sm:$0xff]  }
  0x8d   :  { %1557 = vmatprep.mubr.bf16.mxu1 %v2306_v39  ;;  %v2402_v39 = vld [vmem:[#allocation7 + $0x22c] ss:$16 sps:$4 sm:$0xff]  }
  0x93   :  { %1269 = vmatmul.mubr.bf16.gmra.mrb[4].mxu0 %v2308_v40  ;;  %v2404_v40 = vld [vmem:[#allocation7 + $0x220] ss:$16 sps:$4 sm:$0xff]  }
  0x94   :  { %1558 = vmatmul.mubr.bf16.gmra.mrb[4].mxu1 %v2309_v41  ;;  %1276 = vmatprep.mubr.bf16.mxu0 %v2310_v42  ;;  %v2405_v41 = vld [vmem:[#allocation7 + $0x228] ss:$16 sps:$4 sm:$0xff]   ;;  %v2406_v42 = vld [vmem:[#allocation7 + $0x244] ss:$16 sps:$4 sm:$0xff]  }
  0x95   :  { %1565 = vmatprep.mubr.bf16.mxu1 %v2312_v43  ;;  %v2408_v43 = vld [vmem:[#allocation7 + $0x24c] ss:$16 sps:$4 sm:$0xff]  }
  0x9b   :  { %1277 = vmatmul.mubr.bf16.gmra.mrb[8].mxu0 %v2314_v44  ;;  %v2410_v44 = vld [vmem:[#allocation7 + $0x240] ss:$16 sps:$4 sm:$0xff]  }
  0x9c   :  { %1566 = vmatmul.mubr.bf16.gmra.mrb[8].mxu1 %v2315_v45  ;;  %1284 = vmatprep.mubr.bf16.mxu0 %v2316_v46  ;;  %v2411_v45 = vld [vmem:[#allocation7 + $0x248] ss:$16 sps:$4 sm:$0xff]   ;;  %v2412_v46 = vld [vmem:[#allocation7 + $0x264] ss:$16 sps:$4 sm:$0xff]  }
  0x9d   :  { %1573 = vmatprep.mubr.bf16.mxu1 %v2318_v47  ;;  %v2414_v47 = vld [vmem:[#allocation7 + $0x26c] ss:$16 sps:$4 sm:$0xff]  }
  0xa3   :  { %1285 = vmatmul.mubr.bf16.gmra.mrb[12].mxu0 %v2320_v48  ;;  %v2416_v48 = vld [vmem:[#allocation7 + $0x260] ss:$16 sps:$4 sm:$0xff]  }
  0xa4   :  { %1574 = vmatmul.mubr.bf16.gmra.mrb[12].mxu1 %v2321_v49  ;;  %1292 = vmatprep.mubr.bf16.mxu0 %v2322_v50  ;;  %v2417_v49 = vld [vmem:[#allocation7 + $0x268] ss:$16 sps:$4 sm:$0xff]   ;;  %v2418_v50 = vld [vmem:[#allocation7 + $0x284] ss:$16 sps:$4 sm:$0xff]  }
  0xa5   :  { %1581 = vmatprep.mubr.bf16.mxu1 %v2324_v51  ;;  %v2420_v51 = vld [vmem:[#allocation7 + $0x28c] ss:$16 sps:$4 sm:$0xff]  }
  0xab   :  { %1293 = vmatmul.mubr.bf16.gmra.mrb[16].mxu0 %v2326_v52  ;;  %v2422_v52 = vld [vmem:[#allocation7 + $0x280] ss:$16 sps:$4 sm:$0xff]  }
  0xac   :  { %1582 = vmatmul.mubr.bf16.gmra.mrb[16].mxu1 %v2327_v53  ;;  %1300 = vmatprep.mubr.bf16.mxu0 %v2328_v54  ;;  %v2423_v53 = vld [vmem:[#allocation7 + $0x288] ss:$16 sps:$4 sm:$0xff]   ;;  %v2424_v54 = vld [vmem:[#allocation7 + $0x2a4] ss:$16 sps:$4 sm:$0xff]  }
  0xad   :  { %1589 = vmatprep.mubr.bf16.mxu1 %v2330_v55  ;;  %v2426_v55 = vld [vmem:[#allocation7 + $0x2ac] ss:$16 sps:$4 sm:$0xff]  }
  0xb3   :  { %1301 = vmatmul.mubr.bf16.gmra.mrb[20].mxu0 %v2332_v56  ;;  %v2428_v56 = vld [vmem:[#allocation7 + $0x2a0] ss:$16 sps:$4 sm:$0xff]  }
  0xb4   :  { %1590 = vmatmul.mubr.bf16.gmra.mrb[20].mxu1 %v2333_v57  ;;  %1308 = vmatprep.mubr.bf16.mxu0 %v2334_v58  ;;  %v2429_v57 = vld [vmem:[#allocation7 + $0x2a8] ss:$16 sps:$4 sm:$0xff]   ;;  %v2430_v58 = vld [vmem:[#allocation7 + $0x2c4] ss:$16 sps:$4 sm:$0xff]  }
  0xb5   :  { %1597 = vmatprep.mubr.bf16.mxu1 %v2336_v59  ;;  %v2432_v59 = vld [vmem:[#allocation7 + $0x2cc] ss:$16 sps:$4 sm:$0xff]  }
  0xbb   :  { %1309 = vmatmul.mubr.bf16.gmra.mrb[24].mxu0 %v2338_v60  ;;  %v2434_v60 = vld [vmem:[#allocation7 + $0x2c0] ss:$16 sps:$4 sm:$0xff]  }
  0xbc   :  { %1598 = vmatmul.mubr.bf16.gmra.mrb[24].mxu1 %v2339_v61  ;;  %1316 = vmatprep.mubr.bf16.mxu0 %v2340_v62  ;;  %v2435_v61 = vld [vmem:[#allocation7 + $0x2c8] ss:$16 sps:$4 sm:$0xff]   ;;  %v2436_v62 = vld [vmem:[#allocation7 + $0x2e4] ss:$16 sps:$4 sm:$0xff]  }
  0xbd   :  { %1605 = vmatprep.mubr.bf16.mxu1 %v2342_v63  ;;  %v2438_v63 = vld [vmem:[#allocation7 + $0x2ec] ss:$16 sps:$4 sm:$0xff]  }
  0xc3   :  { %1317 = vmatmul.mubr.bf16.gmra.mrb[28].mxu0 %v2344_v0  ;;  %v2440_v0 = vld [vmem:[#allocation7 + $0x2e0] ss:$16 sps:$4 sm:$0xff]  }
  0xc4   :  { %1606 = vmatmul.mubr.bf16.gmra.mrb[28].mxu1 %v2345_v1  ;;  %1324 = vmatprep.mubr.bf16.mxu0 %v2346_v2  ;;  %v2441_v1 = vld [vmem:[#allocation7 + $0x2e8] ss:$16 sps:$4 sm:$0xff]   ;;  %v2442_v2 = vld [vmem:[#allocation7 + $0x304] ss:$16 sps:$4 sm:$0xff]  }
  0xc5   :  { %1613 = vmatprep.mubr.bf16.mxu1 %v2348_v3  ;;  %v2444_v3 = vld [vmem:[#allocation7 + $0x30c] ss:$16 sps:$4 sm:$0xff]  }
  0xcb   :  { %1325 = vmatmul.mubr.bf16.gmra.mrb[32].mxu0 %v2350_v4  ;;  %v2446_v4 = vld [vmem:[#allocation7 + $0x300] ss:$16 sps:$4 sm:$0xff]  }
  0xcc   :  { %1614 = vmatmul.mubr.bf16.gmra.mrb[32].mxu1 %v2351_v5  ;;  %1332 = vmatprep.mubr.bf16.mxu0 %v2352_v6  ;;  %v2447_v5 = vld [vmem:[#allocation7 + $0x308] ss:$16 sps:$4 sm:$0xff]   ;;  %v2448_v6 = vld [vmem:[#allocation7 + $0x324] ss:$16 sps:$4 sm:$0xff]  }
  0xcd   :  { %1621 = vmatprep.mubr.bf16.mxu1 %v2354_v7  ;;  %v2450_v7 = vld [vmem:[#allocation7 + $0x32c] ss:$16 sps:$4 sm:$0xff]  }
  0xd3   :  { %1333 = vmatmul.mubr.bf16.gmra.mrb[36].mxu0 %v2356_v8  ;;  %v2452_v8 = vld [vmem:[#allocation7 + $0x320] ss:$16 sps:$4 sm:$0xff]  }
  0xd4   :  { %1622 = vmatmul.mubr.bf16.gmra.mrb[36].mxu1 %v2357_v9  ;;  %1340 = vmatprep.mubr.bf16.mxu0 %v2358_v10  ;;  %v2453_v9 = vld [vmem:[#allocation7 + $0x328] ss:$16 sps:$4 sm:$0xff]   ;;  %v2454_v10 = vld [vmem:[#allocation7 + $0x344] ss:$16 sps:$4 sm:$0xff]  }
  0xd5   :  { %1629 = vmatprep.mubr.bf16.mxu1 %v2360_v11  ;;  %v2456_v11 = vld [vmem:[#allocation7 + $0x34c] ss:$16 sps:$4 sm:$0xff]  }
  0xdb   :  { %1341 = vmatmul.mubr.bf16.gmra.mrb[40].mxu0 %v2362_v12  ;;  %v2458_v12 = vld [vmem:[#allocation7 + $0x340] ss:$16 sps:$4 sm:$0xff]  }
  0xdc   :  { %1630 = vmatmul.mubr.bf16.gmra.mrb[40].mxu1 %v2363_v13  ;;  %1348 = vmatprep.mubr.bf16.mxu0 %v2364_v14  ;;  %v2459_v13 = vld [vmem:[#allocation7 + $0x348] ss:$16 sps:$4 sm:$0xff]   ;;  %v2460_v14 = vld [vmem:[#allocation7 + $0x364] ss:$16 sps:$4 sm:$0xff]  }
  0xdd   :  { %1637 = vmatprep.mubr.bf16.mxu1 %v2366_v15  ;;  %v2462_v15 = vld [vmem:[#allocation7 + $0x36c] ss:$16 sps:$4 sm:$0xff]  }
  0xe3   :  { %1349 = vmatmul.mubr.bf16.gmra.mrb[44].mxu0 %v2368_v16 }
  0xe4   :  { %1638 = vmatmul.mubr.bf16.gmra.mrb[44].mxu1 %v2369_v17  ;;  %1356 = vmatprep.mubr.bf16.mxu0 %v2370_v18  ;;  %v332_v17 = vld [vmem:[#allocation2] sm:$0xff] }
  0xe5   :  { %1645 = vmatprep.mubr.bf16.mxu1 %v2372_v19 }
  0xeb   :  { %1357 = vmatmul.mubr.bf16.gmra.mrb[48].mxu0 %v2374_v20  ;;  %v2464_v20 = vld [vmem:[#allocation7 + $0x360] ss:$16 sps:$4 sm:$0xff]  }
  0xec   :  { %1646 = vmatmul.mubr.bf16.gmra.mrb[48].mxu1 %v2375_v21  ;;  %1364 = vmatprep.mubr.bf16.mxu0 %v2376_v22 }
  0xed   :  { %1653 = vmatprep.mubr.bf16.mxu1 %v2378_v23 }
  0xf3   :  { %1365 = vmatmul.mubr.bf16.gmra.mrb[52].mxu0 %v2380_v24  ;;  %v2465_v24 = vld [vmem:[#allocation7 + $0x368] ss:$16 sps:$4 sm:$0xff]  }
  0xf4   :  { %1654 = vmatmul.mubr.bf16.gmra.mrb[52].mxu1 %v2381_v25  ;;  %1372 = vmatprep.mubr.bf16.mxu0 %v2382_v26  ;;  %v2466_v25 = vld [vmem:[#allocation7 + $0x384] ss:$16 sps:$4 sm:$0xff]   ;;  %v333_v26 = vld [vmem:[#allocation2 + $0x8] sm:$0xff] }
  0xf5   :  { %1661 = vmatprep.mubr.bf16.mxu1 %v2384_v27 }
  0xfb   :  { %1373 = vmatmul.mubr.bf16.gmra.mrb[56].mxu0 %v2386_v28 }
  0xfc   :  { %1662 = vmatmul.mubr.bf16.gmra.mrb[56].mxu1 %v2387_v29  ;;  %1380 = vmatprep.mubr.bf16.mxu0 %v2388_v30  ;;  %v2468_v29 = vld [vmem:[#allocation7 + $0x38c] ss:$16 sps:$4 sm:$0xff]  }
  0xfd   :  { %1669 = vmatprep.mubr.bf16.mxu1 %v2390_v31 }
 0x103   :  { %1381 = vmatmul.mubr.bf16.gmra.mrb[60].mxu0 %v2392_v32 }
 0x104   :  { %1670 = vmatmul.mubr.bf16.gmra.mrb[60].mxu1 %v2393_v33  ;;  %1388 = vmatprep.mubr.bf16.mxu0 %v2394_v34 }
 0x105   :  { %1677 = vmatprep.mubr.bf16.mxu1 %v2396_v35  ;;  %v334_v35 = vld [vmem:[#allocation2 + $0x10] sm:$0xff] }
 0x10b   :  { %1389 = vmatmul.mubr.bf16.gmra.mrb[64].mxu0 %v2398_v36 }
 0x10c   :  { %1678 = vmatmul.mubr.bf16.gmra.mrb[64].mxu1 %v2399_v37  ;;  %1396 = vmatprep.mubr.bf16.mxu0 %v2400_v38  ;;  %v2470_v38 = vld [vmem:[#allocation7 + $0x380] ss:$16 sps:$4 sm:$0xff]  }
 0x10d   :  { %1685 = vmatprep.mubr.bf16.mxu1 %v2402_v39 }
 0x113   :  { %1397 = vmatmul.mubr.bf16.gmra.mrb[68].mxu0 %v2404_v40 }
 0x114   :  { %1686 = vmatmul.mubr.bf16.gmra.mrb[68].mxu1 %v2405_v41  ;;  %1404 = vmatprep.mubr.bf16.mxu0 %v2406_v42  ;;  %v2471_v42 = vld [vmem:[#allocation7 + $0x388] ss:$16 sps:$4 sm:$0xff]  }
 0x115   :  { %1693 = vmatprep.mubr.bf16.mxu1 %v2408_v43  ;;  %v2472_v43 = vld [vmem:[#allocation7 + $0x3a4] ss:$16 sps:$4 sm:$0xff]  }
 0x11b   :  { %1405 = vmatmul.mubr.bf16.gmra.mrb[72].mxu0 %v2410_v44  ;;  %v335_v44 = vld [vmem:[#allocation2 + $0x18] sm:$0xff] }
 0x11c   :  { %1694 = vmatmul.mubr.bf16.gmra.mrb[72].mxu1 %v2411_v45  ;;  %1412 = vmatprep.mubr.bf16.mxu0 %v2412_v46 }
 0x11d   :  { %1701 = vmatprep.mubr.bf16.mxu1 %v2414_v47  ;;  %v2474_v47 = vld [vmem:[#allocation7 + $0x3ac] ss:$16 sps:$4 sm:$0xff]  }
 0x123   :  { %1413 = vmatmul.mubr.bf16.gmra.mrb[76].mxu0 %v2416_v48 }
 0x124   :  { %1702 = vmatmul.mubr.bf16.gmra.mrb[76].mxu1 %v2417_v49  ;;  %1420 = vmatprep.mubr.bf16.mxu0 %v2418_v50 }
 0x125   :  { %1709 = vmatprep.mubr.bf16.mxu1 %v2420_v51 }
 0x12b   :  { %1421 = vmatmul.mubr.bf16.gmra.mrb[80].mxu0 %v2422_v52 }
 0x12c   :  { %1710 = vmatmul.mubr.bf16.gmra.mrb[80].mxu1 %v2423_v53  ;;  %1428 = vmatprep.mubr.bf16.mxu0 %v2424_v54  ;;  %v336_v53 = vld [vmem:[#allocation2 + $0x20] sm:$0xff] }
 0x12d   :  { %1717 = vmatprep.mubr.bf16.mxu1 %v2426_v55 }
 0x133   :  { %1429 = vmatmul.mubr.bf16.gmra.mrb[84].mxu0 %v2428_v56  ;;  %v2476_v56 = vld [vmem:[#allocation7 + $0x3a0] ss:$16 sps:$4 sm:$0xff]  }
 0x134   :  { %1718 = vmatmul.mubr.bf16.gmra.mrb[84].mxu1 %v2429_v57  ;;  %1436 = vmatprep.mubr.bf16.mxu0 %v2430_v58 }
 0x135   :  { %1725 = vmatprep.mubr.bf16.mxu1 %v2432_v59 }
 0x13b   :  { %1437 = vmatmul.mubr.bf16.gmra.mrb[88].mxu0 %v2434_v60  ;;  %v2477_v60 = vld [vmem:[#allocation7 + $0x3a8] ss:$16 sps:$4 sm:$0xff]  }
 0x13c   :  { %1726 = vmatmul.mubr.bf16.gmra.mrb[88].mxu1 %v2435_v61  ;;  %1444 = vmatprep.mubr.bf16.mxu0 %v2436_v62  ;;  %v2478_v61 = vld [vmem:[#allocation7 + $0x3c4] ss:$16 sps:$4 sm:$0xff]   ;;  %v337_v62 = vld [vmem:[#allocation2 + $0x28] sm:$0xff] }
 0x13d   :  { %1733 = vmatprep.mubr.bf16.mxu1 %v2438_v63 }
 0x143   :  { %1445 = vmatmul.mubr.bf16.gmra.mrb[92].mxu0 %v2440_v0 }
 0x144   :  { %1734 = vmatmul.mubr.bf16.gmra.mrb[92].mxu1 %v2441_v1  ;;  %1452 = vmatprep.mubr.bf16.mxu0 %v2442_v2  ;;  %v2480_v1 = vld [vmem:[#allocation7 + $0x3cc] ss:$16 sps:$4 sm:$0xff]  }
 0x145   :  { %1741 = vmatprep.mubr.bf16.mxu1 %v2444_v3 }
 0x14b   :  { %1453 = vmatmul.mubr.bf16.gmra.mrb[96].mxu0 %v2446_v4 }
 0x14c   :  { %1742 = vmatmul.mubr.bf16.gmra.mrb[96].mxu1 %v2447_v5  ;;  %1460 = vmatprep.mubr.bf16.mxu0 %v2448_v6 }
 0x14d   :  { %1749 = vmatprep.mubr.bf16.mxu1 %v2450_v7  ;;  %v338_v7 = vld [vmem:[#allocation2 + $0x30] sm:$0xff] }
 0x153   :  { %1461 = vmatmul.mubr.bf16.gmra.mrb[100].mxu0 %v2452_v8 }
 0x154   :  { %1750 = vmatmul.mubr.bf16.gmra.mrb[100].mxu1 %v2453_v9  ;;  %1468 = vmatprep.mubr.bf16.mxu0 %v2454_v10  ;;  %v2482_v10 = vld [vmem:[#allocation7 + $0x3c0] ss:$16 sps:$4 sm:$0xff]  }
 0x155   :  { %1757 = vmatprep.mubr.bf16.mxu1 %v2456_v11 }
 0x15b   :  { %1469 = vmatmul.mubr.bf16.gmra.mrb[104].mxu0 %v2458_v12 }
 0x15c   :  { %1758 = vmatmul.mubr.bf16.gmra.mrb[104].mxu1 %v2459_v13  ;;  %1476 = vmatprep.mubr.bf16.mxu0 %v2460_v14  ;;  %v2483_v14 = vld [vmem:[#allocation7 + $0x3c8] ss:$16 sps:$4 sm:$0xff]  }
 0x15d   :  { %1765 = vmatprep.mubr.bf16.mxu1 %v2462_v15  ;;  %v2484_v15 = vld [vmem:[#allocation7 + $0x3e4] ss:$16 sps:$4 sm:$0xff]  }
 0x15e   :  { %v1262_v16 = vpop.f32.mrb[0].mxu0 }
 0x15f   :  { %v1551_v18 = vpop.f32.mrb[0].mxu1  ;;  %v1264_v19 = vpop.f32.mrb[1].mxu0 }
 0x160   :  { %v1552_v21 = vadd.f32 %v1551_v18, %v1262_v16  ;;  %v1553_v22 = vpop.f32.mrb[1].mxu1  ;;  %v1265_v23 = vpop.f32.mrb[2].mxu0  ;;  %v339_v16 = vld [vmem:[#allocation2 + $0x38] sm:$0xff] }
 0x161   :  { %v1554_v27 = vpop.f32.mrb[2].mxu1  ;;  %v1267_v28 = vpop.f32.mrb[3].mxu0  ;;  %v2486_v19 = vld [vmem:[#allocation7 + $0x3ec] ss:$16 sps:$4 sm:$0xff]  }
 0x162   :  { %v1806_v30 = vadd.f32 %v1552_v21, %v332_v17  ;;  %v1555_v31 = vadd.f32 %v1554_v27, %v1265_v23  ;;  %v1556_v32 = vpop.f32.mrb[3].mxu1  ;;  %v2488_v28 = vld [vmem:[#allocation7 + $0x3e0] ss:$16 sps:$4 sm:$0xff]  }
 0x163   :  { %1477 = vmatmul.mubr.bf16.gmra.mrb[108].mxu0 %v2464_v20  ;;  %v2489_v32 = vld [vmem:[#allocation7 + $0x3e8] ss:$16 sps:$4 sm:$0xff]  }
 0x164   :  { %1870 = vst [vmem:[#allocation2] sm:$0xff] %v1806_v30  ;;  %v1807_v33 = vadd.f32 %v1555_v31, %v333_v26  ;;  %1766 = vmatmul.mubr.bf16.gmra.mrb[108].mxu1 %v2465_v24  ;;  %1484 = vmatprep.mubr.bf16.mxu0 %v2466_v25  ;;  %v340_v25 = vld [vmem:[#allocation2 + $0x40] sm:$0xff] }
 0x165   :  { %1773 = vmatprep.mubr.bf16.mxu1 %v2468_v29 }
 0x166   :  { %1871 = vst [vmem:[#allocation2 + $0x8] sm:$0xff] %v1807_v33  ;;  %v1270_v34 = vpop.f32.mrb[4].mxu0  ;;  %v341_v33 = vld [vmem:[#allocation2 + $0x48] sm:$0xff] }
 0x167   :  { %v1559_v36 = vpop.f32.mrb[4].mxu1  ;;  %v1272_v37 = vpop.f32.mrb[5].mxu0 }
 0x168   :  { %v1560_v39 = vadd.f32 %v1559_v36, %v1270_v34  ;;  %v1561_v40 = vpop.f32.mrb[5].mxu1  ;;  %v1273_v41 = vpop.f32.mrb[6].mxu0 }
 0x169   :  { %v1562_v45 = vpop.f32.mrb[6].mxu1  ;;  %v1275_v46 = vpop.f32.mrb[7].mxu0 }
 0x16a   :  { %v1808_v48 = vadd.f32 %v1560_v39, %v334_v35  ;;  %v1563_v49 = vadd.f32 %v1562_v45, %v1273_v41  ;;  %v1564_v50 = vpop.f32.mrb[7].mxu1  ;;  %v342_v41 = vld [vmem:[#allocation2 + $0x50] sm:$0xff] }
 0x16b   :  { %1485 = vmatmul.mubr.bf16.gmra.mrb[112].mxu0 %v2470_v38 }
 0x16c   :  { %1872 = vst [vmem:[#allocation2 + $0x10] sm:$0xff] %v1808_v48  ;;  %v1809_v51 = vadd.f32 %v1563_v49, %v335_v44  ;;  %1774 = vmatmul.mubr.bf16.gmra.mrb[112].mxu1 %v2471_v42  ;;  %1492 = vmatprep.mubr.bf16.mxu0 %v2472_v43 }
 0x16d   :  { %1781 = vmatprep.mubr.bf16.mxu1 %v2474_v47  ;;  %v343_v47 = vld [vmem:[#allocation2 + $0x58] sm:$0xff] }
 0x16e   :  { %1873 = vst [vmem:[#allocation2 + $0x18] sm:$0xff] %v1809_v51  ;;  %v1278_v52 = vpop.f32.mrb[8].mxu0 }
 0x16f   :  { %v1567_v54 = vpop.f32.mrb[8].mxu1  ;;  %v1280_v55 = vpop.f32.mrb[9].mxu0 }
 0x170   :  { %v1568_v57 = vadd.f32 %v1567_v54, %v1278_v52  ;;  %v1569_v58 = vpop.f32.mrb[9].mxu1  ;;  %v1281_v59 = vpop.f32.mrb[10].mxu0  ;;  %v344_v55 = vld [vmem:[#allocation2 + $0x60] sm:$0xff] }
 0x171   :  { %v1570_v63 = vpop.f32.mrb[10].mxu1  ;;  %v1283_v0 = vpop.f32.mrb[11].mxu0 }
 0x172   :  { %v1810_v2 = vadd.f32 %v1568_v57, %v336_v53  ;;  %v1571_v3 = vadd.f32 %v1570_v63, %v1281_v59  ;;  %v1572_v4 = vpop.f32.mrb[11].mxu1 }
 0x173   :  { %1493 = vmatmul.mubr.bf16.gmra.mrb[116].mxu0 %v2476_v56 }
 0x174   :  { %1874 = vst [vmem:[#allocation2 + $0x20] sm:$0xff] %v1810_v2  ;;  %v1811_v5 = vadd.f32 %v1571_v3, %v337_v62  ;;  %1782 = vmatmul.mubr.bf16.gmra.mrb[116].mxu1 %v2477_v60  ;;  %1500 = vmatprep.mubr.bf16.mxu0 %v2478_v61  ;;  %v345_v61 = vld [vmem:[#allocation2 + $0x68] sm:$0xff] }
 0x175   :  { %1789 = vmatprep.mubr.bf16.mxu1 %v2480_v1 }
 0x176   :  { %1875 = vst [vmem:[#allocation2 + $0x28] sm:$0xff] %v1811_v5  ;;  %v1286_v6 = vpop.f32.mrb[12].mxu0  ;;  %v346_v5 = vld [vmem:[#allocation2 + $0x70] sm:$0xff] }
 0x177   :  { %v1575_v8 = vpop.f32.mrb[12].mxu1  ;;  %v1288_v9 = vpop.f32.mrb[13].mxu0 }
 0x178   :  { %v1576_v11 = vadd.f32 %v1575_v8, %v1286_v6  ;;  %v1577_v12 = vpop.f32.mrb[13].mxu1  ;;  %v1289_v13 = vpop.f32.mrb[14].mxu0 }
 0x179   :  { %v1578_v17 = vpop.f32.mrb[14].mxu1  ;;  %v1291_v18 = vpop.f32.mrb[15].mxu0 }
 0x17a   :  { %v1812_v20 = vadd.f32 %v1576_v11, %v338_v7  ;;  %v1579_v21 = vadd.f32 %v1578_v17, %v1289_v13  ;;  %v1580_v22 = vpop.f32.mrb[15].mxu1  ;;  %v347_v11 = vld [vmem:[#allocation2 + $0x78] sm:$0xff] }
 0x17b   :  { %1501 = vmatmul.mubr.bf16.gmra.mrb[120].mxu0 %v2482_v10 }
 0x17c   :  { %1876 = vst [vmem:[#allocation2 + $0x30] sm:$0xff] %v1812_v20  ;;  %v1813_v23 = vadd.f32 %v1579_v21, %v339_v16  ;;  %1790 = vmatmul.mubr.bf16.gmra.mrb[120].mxu1 %v2483_v14  ;;  %1508 = vmatprep.mubr.bf16.mxu0 %v2484_v15 }
 0x17d   :  { %1797 = vmatprep.mubr.bf16.mxu1 %v2486_v19  ;;  %v348_v19 = vld [vmem:[#allocation2 + $0x80] sm:$0xff] }
 0x17e   :  { %1877 = vst [vmem:[#allocation2 + $0x38] sm:$0xff] %v1813_v23  ;;  %v1294_v24 = vpop.f32.mrb[16].mxu0 }
 0x17f   :  { %v1583_v26 = vpop.f32.mrb[16].mxu1  ;;  %v1296_v27 = vpop.f32.mrb[17].mxu0 }
 0x180   :  { %v1584_v29 = vadd.f32 %v1583_v26, %v1294_v24  ;;  %v1585_v30 = vpop.f32.mrb[17].mxu1  ;;  %v1297_v31 = vpop.f32.mrb[18].mxu0 }
 0x181   :  { %v1586_v34 = vpop.f32.mrb[18].mxu1  ;;  %v1299_v35 = vpop.f32.mrb[19].mxu0 }
 0x182   :  { %v1814_v36 = vadd.f32 %v1584_v29, %v340_v25  ;;  %v1587_v37 = vadd.f32 %v1586_v34, %v1297_v31  ;;  %v1588_v38 = vpop.f32.mrb[19].mxu1  ;;  %v349_v25 = vld [vmem:[#allocation2 + $0x88] sm:$0xff] }
 0x183   :  { %1509 = vmatmul.mubr.bf16.gmra.mrb[124].mxu0 %v2488_v28 }
 0x184   :  { %1878 = vst [vmem:[#allocation2 + $0x40] sm:$0xff] %v1814_v36  ;;  %v1815_v39 = vadd.f32 %v1587_v37, %v341_v33  ;;  %1798 = vmatmul.mubr.bf16.gmra.mrb[124].mxu1 %v2489_v32  ;;  %v350_v33 = vld [vmem:[#allocation2 + $0x90] sm:$0xff] }
 0x186   :  { %1879 = vst [vmem:[#allocation2 + $0x48] sm:$0xff] %v1815_v39  ;;  %v1302_v40 = vpop.f32.mrb[20].mxu0  ;;  %v351_v39 = vld [vmem:[#allocation2 + $0x98] sm:$0xff] }
 0x187   :  { %v1591_v42 = vpop.f32.mrb[20].mxu1  ;;  %v1304_v43 = vpop.f32.mrb[21].mxu0 }
 0x188   :  { %v1592_v44 = vadd.f32 %v1591_v42, %v1302_v40  ;;  %v1593_v45 = vpop.f32.mrb[21].mxu1  ;;  %v1305_v46 = vpop.f32.mrb[22].mxu0 }
 0x189   :  { %v1594_v48 = vpop.f32.mrb[22].mxu1  ;;  %v1307_v49 = vpop.f32.mrb[23].mxu0 }
 0x18a   :  { %v1816_v50 = vadd.f32 %v1592_v44, %v342_v41  ;;  %v1595_v51 = vadd.f32 %v1594_v48, %v1305_v46  ;;  %v1596_v52 = vpop.f32.mrb[23].mxu1 }
 0x18c   :  { %1880 = vst [vmem:[#allocation2 + $0x50] sm:$0xff] %v1816_v50  ;;  %v1817_v53 = vadd.f32 %v1595_v51, %v343_v47  ;;  %v352_v47 = vld [vmem:[#allocation2 + $0xa0] sm:$0xff] }
 0x18e   :  { %1881 = vst [vmem:[#allocation2 + $0x58] sm:$0xff] %v1817_v53  ;;  %v1310_v54 = vpop.f32.mrb[24].mxu0  ;;  %v353_v53 = vld [vmem:[#allocation2 + $0xa8] sm:$0xff] }
 0x18f   :  { %v1599_v56 = vpop.f32.mrb[24].mxu1  ;;  %v1312_v57 = vpop.f32.mrb[25].mxu0 }
 0x190   :  { %v1600_v58 = vadd.f32 %v1599_v56, %v1310_v54  ;;  %v1601_v59 = vpop.f32.mrb[25].mxu1  ;;  %v1313_v60 = vpop.f32.mrb[26].mxu0 }
 0x191   :  { %v1602_v62 = vpop.f32.mrb[26].mxu1  ;;  %v1315_v63 = vpop.f32.mrb[27].mxu0 }
 0x192   :  { %v1818_v0 = vadd.f32 %v1600_v58, %v344_v55  ;;  %v1603_v1 = vadd.f32 %v1602_v62, %v1313_v60  ;;  %v1604_v2 = vpop.f32.mrb[27].mxu1 }
 0x194   :  { %1882 = vst [vmem:[#allocation2 + $0x60] sm:$0xff] %v1818_v0  ;;  %v1819_v3 = vadd.f32 %v1603_v1, %v345_v61  ;;  %v354_v61 = vld [vmem:[#allocation2 + $0xb0] sm:$0xff] }
 0x196   :  { %1883 = vst [vmem:[#allocation2 + $0x68] sm:$0xff] %v1819_v3  ;;  %v1318_v4 = vpop.f32.mrb[28].mxu0  ;;  %v355_v3 = vld [vmem:[#allocation2 + $0xb8] sm:$0xff] }
 0x197   :  { %v1607_v6 = vpop.f32.mrb[28].mxu1  ;;  %v1320_v7 = vpop.f32.mrb[29].mxu0 }
 0x198   :  { %v1608_v8 = vadd.f32 %v1607_v6, %v1318_v4  ;;  %v1609_v9 = vpop.f32.mrb[29].mxu1  ;;  %v1321_v10 = vpop.f32.mrb[30].mxu0 }
 0x199   :  { %v1610_v12 = vpop.f32.mrb[30].mxu1  ;;  %v1323_v13 = vpop.f32.mrb[31].mxu0 }
 0x19a   :  { %v1820_v14 = vadd.f32 %v1608_v8, %v346_v5  ;;  %v1611_v15 = vadd.f32 %v1610_v12, %v1321_v10  ;;  %v1612_v16 = vpop.f32.mrb[31].mxu1 }
 0x19c   :  { %1884 = vst [vmem:[#allocation2 + $0x70] sm:$0xff] %v1820_v14  ;;  %v1821_v17 = vadd.f32 %v1611_v15, %v347_v11  ;;  %v356_v11 = vld [vmem:[#allocation2 + $0xc0] sm:$0xff] }
 0x19e   :  { %1885 = vst [vmem:[#allocation2 + $0x78] sm:$0xff] %v1821_v17  ;;  %v1326_v18 = vpop.f32.mrb[32].mxu0  ;;  %v357_v17 = vld [vmem:[#allocation2 + $0xc8] sm:$0xff] }
 0x19f   :  { %v1615_v20 = vpop.f32.mrb[32].mxu1  ;;  %v1328_v21 = vpop.f32.mrb[33].mxu0 }
 0x1a0   :  { %v1616_v22 = vadd.f32 %v1615_v20, %v1326_v18  ;;  %v1617_v23 = vpop.f32.mrb[33].mxu1  ;;  %v1329_v24 = vpop.f32.mrb[34].mxu0 }
 0x1a1   :  { %v1618_v26 = vpop.f32.mrb[34].mxu1  ;;  %v1331_v27 = vpop.f32.mrb[35].mxu0 }
 0x1a2   :  { %v1822_v28 = vadd.f32 %v1616_v22, %v348_v19  ;;  %v1619_v29 = vadd.f32 %v1618_v26, %v1329_v24  ;;  %v1620_v30 = vpop.f32.mrb[35].mxu1 }
 0x1a4   :  { %1886 = vst [vmem:[#allocation2 + $0x80] sm:$0xff] %v1822_v28  ;;  %v1823_v31 = vadd.f32 %v1619_v29, %v349_v25  ;;  %v358_v25 = vld [vmem:[#allocation2 + $0xd0] sm:$0xff] }
 0x1a6   :  { %1887 = vst [vmem:[#allocation2 + $0x88] sm:$0xff] %v1823_v31  ;;  %v1334_v32 = vpop.f32.mrb[36].mxu0  ;;  %v359_v31 = vld [vmem:[#allocation2 + $0xd8] sm:$0xff] }
 0x1a7   :  { %v1623_v34 = vpop.f32.mrb[36].mxu1  ;;  %v1336_v35 = vpop.f32.mrb[37].mxu0 }
 0x1a8   :  { %v1624_v36 = vadd.f32 %v1623_v34, %v1334_v32  ;;  %v1625_v37 = vpop.f32.mrb[37].mxu1  ;;  %v1337_v38 = vpop.f32.mrb[38].mxu0 }
 0x1a9   :  { %v1626_v40 = vpop.f32.mrb[38].mxu1  ;;  %v1339_v41 = vpop.f32.mrb[39].mxu0 }
 0x1aa   :  { %v1824_v42 = vadd.f32 %v1624_v36, %v350_v33  ;;  %v1627_v43 = vadd.f32 %v1626_v40, %v1337_v38  ;;  %v1628_v44 = vpop.f32.mrb[39].mxu1 }
 0x1ac   :  { %1888 = vst [vmem:[#allocation2 + $0x90] sm:$0xff] %v1824_v42  ;;  %v1825_v45 = vadd.f32 %v1627_v43, %v351_v39  ;;  %v360_v39 = vld [vmem:[#allocation2 + $0xe0] sm:$0xff] }
 0x1ae   :  { %1889 = vst [vmem:[#allocation2 + $0x98] sm:$0xff] %v1825_v45  ;;  %v1342_v46 = vpop.f32.mrb[40].mxu0  ;;  %v361_v45 = vld [vmem:[#allocation2 + $0xe8] sm:$0xff] }
 0x1af   :  { %v1631_v48 = vpop.f32.mrb[40].mxu1  ;;  %v1344_v49 = vpop.f32.mrb[41].mxu0 }
 0x1b0   :  { %v1632_v50 = vadd.f32 %v1631_v48, %v1342_v46  ;;  %v1633_v51 = vpop.f32.mrb[41].mxu1  ;;  %v1345_v52 = vpop.f32.mrb[42].mxu0 }
 0x1b1   :  { %v1634_v54 = vpop.f32.mrb[42].mxu1  ;;  %v1347_v55 = vpop.f32.mrb[43].mxu0 }
 0x1b2   :  { %v1826_v56 = vadd.f32 %v1632_v50, %v352_v47  ;;  %v1635_v57 = vadd.f32 %v1634_v54, %v1345_v52  ;;  %v1636_v58 = vpop.f32.mrb[43].mxu1 }
 0x1b4   :  { %1890 = vst [vmem:[#allocation2 + $0xa0] sm:$0xff] %v1826_v56  ;;  %v1827_v59 = vadd.f32 %v1635_v57, %v353_v53  ;;  %v362_v53 = vld [vmem:[#allocation2 + $0xf0] sm:$0xff] }
 0x1b6   :  { %1891 = vst [vmem:[#allocation2 + $0xa8] sm:$0xff] %v1827_v59  ;;  %v1350_v60 = vpop.f32.mrb[44].mxu0  ;;  %v363_v59 = vld [vmem:[#allocation2 + $0xf8] sm:$0xff] }
 0x1b7   :  { %v1639_v62 = vpop.f32.mrb[44].mxu1  ;;  %v1352_v63 = vpop.f32.mrb[45].mxu0 }
 0x1b8   :  { %v1640_v0 = vadd.f32 %v1639_v62, %v1350_v60  ;;  %v1641_v1 = vpop.f32.mrb[45].mxu1  ;;  %v1353_v2 = vpop.f32.mrb[46].mxu0 }
 0x1b9   :  { %v1642_v4 = vpop.f32.mrb[46].mxu1  ;;  %v1355_v5 = vpop.f32.mrb[47].mxu0 }
 0x1ba   :  { %v1828_v6 = vadd.f32 %v1640_v0, %v354_v61  ;;  %v1643_v7 = vadd.f32 %v1642_v4, %v1353_v2  ;;  %v1644_v8 = vpop.f32.mrb[47].mxu1 }
 0x1bc   :  { %1892 = vst [vmem:[#allocation2 + $0xb0] sm:$0xff] %v1828_v6  ;;  %v1829_v9 = vadd.f32 %v1643_v7, %v355_v3  ;;  %v364_v3 = vld [vmem:[#allocation2 + $0x100] sm:$0xff] }
 0x1be   :  { %1893 = vst [vmem:[#allocation2 + $0xb8] sm:$0xff] %v1829_v9  ;;  %v1358_v10 = vpop.f32.mrb[48].mxu0  ;;  %v365_v9 = vld [vmem:[#allocation2 + $0x108] sm:$0xff] }
 0x1bf   :  { %v1647_v12 = vpop.f32.mrb[48].mxu1  ;;  %v1360_v13 = vpop.f32.mrb[49].mxu0 }
 0x1c0   :  { %v1648_v14 = vadd.f32 %v1647_v12, %v1358_v10  ;;  %v1649_v15 = vpop.f32.mrb[49].mxu1  ;;  %v1361_v16 = vpop.f32.mrb[50].mxu0 }
 0x1c1   :  { %v1650_v18 = vpop.f32.mrb[50].mxu1  ;;  %v1363_v19 = vpop.f32.mrb[51].mxu0 }
 0x1c2   :  { %v1830_v20 = vadd.f32 %v1648_v14, %v356_v11  ;;  %v1651_v21 = vadd.f32 %v1650_v18, %v1361_v16  ;;  %v1652_v22 = vpop.f32.mrb[51].mxu1 }
 0x1c4   :  { %1894 = vst [vmem:[#allocation2 + $0xc0] sm:$0xff] %v1830_v20  ;;  %v1831_v23 = vadd.f32 %v1651_v21, %v357_v17  ;;  %v366_v17 = vld [vmem:[#allocation2 + $0x110] sm:$0xff] }
 0x1c6   :  { %1895 = vst [vmem:[#allocation2 + $0xc8] sm:$0xff] %v1831_v23  ;;  %v1366_v24 = vpop.f32.mrb[52].mxu0  ;;  %v367_v23 = vld [vmem:[#allocation2 + $0x118] sm:$0xff] }
 0x1c7   :  { %v1655_v26 = vpop.f32.mrb[52].mxu1  ;;  %v1368_v27 = vpop.f32.mrb[53].mxu0 }
 0x1c8   :  { %v1656_v28 = vadd.f32 %v1655_v26, %v1366_v24  ;;  %v1657_v29 = vpop.f32.mrb[53].mxu1  ;;  %v1369_v30 = vpop.f32.mrb[54].mxu0 }
 0x1c9   :  { %v1658_v32 = vpop.f32.mrb[54].mxu1  ;;  %v1371_v33 = vpop.f32.mrb[55].mxu0 }
 0x1ca   :  { %v1832_v34 = vadd.f32 %v1656_v28, %v358_v25  ;;  %v1659_v35 = vadd.f32 %v1658_v32, %v1369_v30  ;;  %v1660_v36 = vpop.f32.mrb[55].mxu1 }
 0x1cc   :  { %1896 = vst [vmem:[#allocation2 + $0xd0] sm:$0xff] %v1832_v34  ;;  %v1833_v37 = vadd.f32 %v1659_v35, %v359_v31  ;;  %v368_v31 = vld [vmem:[#allocation2 + $0x120] sm:$0xff] }
 0x1ce   :  { %1897 = vst [vmem:[#allocation2 + $0xd8] sm:$0xff] %v1833_v37  ;;  %v1374_v38 = vpop.f32.mrb[56].mxu0  ;;  %v369_v37 = vld [vmem:[#allocation2 + $0x128] sm:$0xff] }
 0x1cf   :  { %v1663_v40 = vpop.f32.mrb[56].mxu1  ;;  %v1376_v41 = vpop.f32.mrb[57].mxu0 }
 0x1d0   :  { %v1664_v42 = vadd.f32 %v1663_v40, %v1374_v38  ;;  %v1665_v43 = vpop.f32.mrb[57].mxu1  ;;  %v1377_v44 = vpop.f32.mrb[58].mxu0 }
 0x1d1   :  { %v1666_v46 = vpop.f32.mrb[58].mxu1  ;;  %v1379_v47 = vpop.f32.mrb[59].mxu0 }
 0x1d2   :  { %v1834_v48 = vadd.f32 %v1664_v42, %v360_v39  ;;  %v1667_v49 = vadd.f32 %v1666_v46, %v1377_v44  ;;  %v1668_v50 = vpop.f32.mrb[59].mxu1 }
 0x1d4   :  { %1898 = vst [vmem:[#allocation2 + $0xe0] sm:$0xff] %v1834_v48  ;;  %v1835_v51 = vadd.f32 %v1667_v49, %v361_v45  ;;  %v370_v45 = vld [vmem:[#allocation2 + $0x130] sm:$0xff] }
 0x1d6   :  { %1899 = vst [vmem:[#allocation2 + $0xe8] sm:$0xff] %v1835_v51  ;;  %v1382_v52 = vpop.f32.mrb[60].mxu0  ;;  %v371_v51 = vld [vmem:[#allocation2 + $0x138] sm:$0xff] }
 0x1d7   :  { %v1671_v54 = vpop.f32.mrb[60].mxu1  ;;  %v1384_v55 = vpop.f32.mrb[61].mxu0 }
 0x1d8   :  { %v1672_v56 = vadd.f32 %v1671_v54, %v1382_v52  ;;  %v1673_v57 = vpop.f32.mrb[61].mxu1  ;;  %v1385_v58 = vpop.f32.mrb[62].mxu0 }
 0x1d9   :  { %v1674_v60 = vpop.f32.mrb[62].mxu1  ;;  %v1387_v61 = vpop.f32.mrb[63].mxu0 }
 0x1da   :  { %v1836_v62 = vadd.f32 %v1672_v56, %v362_v53  ;;  %v1675_v63 = vadd.f32 %v1674_v60, %v1385_v58  ;;  %v1676_v0 = vpop.f32.mrb[63].mxu1 }
 0x1dc   :  { %1900 = vst [vmem:[#allocation2 + $0xf0] sm:$0xff] %v1836_v62  ;;  %v1837_v1 = vadd.f32 %v1675_v63, %v363_v59  ;;  %v372_v59 = vld [vmem:[#allocation2 + $0x140] sm:$0xff] }
 0x1de   :  { %1901 = vst [vmem:[#allocation2 + $0xf8] sm:$0xff] %v1837_v1  ;;  %v1390_v2 = vpop.f32.mrb[64].mxu0  ;;  %v373_v1 = vld [vmem:[#allocation2 + $0x148] sm:$0xff] }
 0x1df   :  { %v1679_v4 = vpop.f32.mrb[64].mxu1  ;;  %v1392_v5 = vpop.f32.mrb[65].mxu0 }
 0x1e0   :  { %v1680_v6 = vadd.f32 %v1679_v4, %v1390_v2  ;;  %v1681_v7 = vpop.f32.mrb[65].mxu1  ;;  %v1393_v8 = vpop.f32.mrb[66].mxu0 }
 0x1e1   :  { %v1682_v10 = vpop.f32.mrb[66].mxu1  ;;  %v1395_v11 = vpop.f32.mrb[67].mxu0 }
 0x1e2   :  { %v1838_v12 = vadd.f32 %v1680_v6, %v364_v3  ;;  %v1683_v13 = vadd.f32 %v1682_v10, %v1393_v8  ;;  %v1684_v14 = vpop.f32.mrb[67].mxu1 }
 0x1e4   :  { %1902 = vst [vmem:[#allocation2 + $0x100] sm:$0xff] %v1838_v12  ;;  %v1839_v15 = vadd.f32 %v1683_v13, %v365_v9  ;;  %v374_v9 = vld [vmem:[#allocation2 + $0x150] sm:$0xff] }
 0x1e6   :  { %1903 = vst [vmem:[#allocation2 + $0x108] sm:$0xff] %v1839_v15  ;;  %v1398_v16 = vpop.f32.mrb[68].mxu0  ;;  %v375_v15 = vld [vmem:[#allocation2 + $0x158] sm:$0xff] }
 0x1e7   :  { %v1687_v18 = vpop.f32.mrb[68].mxu1  ;;  %v1400_v19 = vpop.f32.mrb[69].mxu0 }
 0x1e8   :  { %v1688_v20 = vadd.f32 %v1687_v18, %v1398_v16  ;;  %v1689_v21 = vpop.f32.mrb[69].mxu1  ;;  %v1401_v22 = vpop.f32.mrb[70].mxu0 }
 0x1e9   :  { %v1690_v24 = vpop.f32.mrb[70].mxu1  ;;  %v1403_v25 = vpop.f32.mrb[71].mxu0 }
 0x1ea   :  { %v1840_v26 = vadd.f32 %v1688_v20, %v366_v17  ;;  %v1691_v27 = vadd.f32 %v1690_v24, %v1401_v22  ;;  %v1692_v28 = vpop.f32.mrb[71].mxu1 }
 0x1ec   :  { %1904 = vst [vmem:[#allocation2 + $0x110] sm:$0xff] %v1840_v26  ;;  %v1841_v29 = vadd.f32 %v1691_v27, %v367_v23  ;;  %v376_v23 = vld [vmem:[#allocation2 + $0x160] sm:$0xff] }
 0x1ee   :  { %1905 = vst [vmem:[#allocation2 + $0x118] sm:$0xff] %v1841_v29  ;;  %v1406_v30 = vpop.f32.mrb[72].mxu0  ;;  %v377_v29 = vld [vmem:[#allocation2 + $0x168] sm:$0xff] }
 0x1ef   :  { %v1695_v32 = vpop.f32.mrb[72].mxu1  ;;  %v1408_v33 = vpop.f32.mrb[73].mxu0 }
 0x1f0   :  { %v1696_v34 = vadd.f32 %v1695_v32, %v1406_v30  ;;  %v1697_v35 = vpop.f32.mrb[73].mxu1  ;;  %v1409_v36 = vpop.f32.mrb[74].mxu0 }
 0x1f1   :  { %v1698_v38 = vpop.f32.mrb[74].mxu1  ;;  %v1411_v39 = vpop.f32.mrb[75].mxu0 }
 0x1f2   :  { %v1842_v40 = vadd.f32 %v1696_v34, %v368_v31  ;;  %v1699_v41 = vadd.f32 %v1698_v38, %v1409_v36  ;;  %v1700_v42 = vpop.f32.mrb[75].mxu1 }
 0x1f4   :  { %1906 = vst [vmem:[#allocation2 + $0x120] sm:$0xff] %v1842_v40  ;;  %v1843_v43 = vadd.f32 %v1699_v41, %v369_v37  ;;  %v378_v37 = vld [vmem:[#allocation2 + $0x170] sm:$0xff] }
 0x1f6   :  { %1907 = vst [vmem:[#allocation2 + $0x128] sm:$0xff] %v1843_v43  ;;  %v1414_v44 = vpop.f32.mrb[76].mxu0  ;;  %v379_v43 = vld [vmem:[#allocation2 + $0x178] sm:$0xff] }
 0x1f7   :  { %v1703_v46 = vpop.f32.mrb[76].mxu1  ;;  %v1416_v47 = vpop.f32.mrb[77].mxu0 }
 0x1f8   :  { %v1704_v48 = vadd.f32 %v1703_v46, %v1414_v44  ;;  %v1705_v49 = vpop.f32.mrb[77].mxu1  ;;  %v1417_v50 = vpop.f32.mrb[78].mxu0 }
 0x1f9   :  { %v1706_v52 = vpop.f32.mrb[78].mxu1  ;;  %v1419_v53 = vpop.f32.mrb[79].mxu0 }
 0x1fa   :  { %v1844_v54 = vadd.f32 %v1704_v48, %v370_v45  ;;  %v1707_v55 = vadd.f32 %v1706_v52, %v1417_v50  ;;  %v1708_v56 = vpop.f32.mrb[79].mxu1 }
 0x1fc   :  { %1908 = vst [vmem:[#allocation2 + $0x130] sm:$0xff] %v1844_v54  ;;  %v1845_v57 = vadd.f32 %v1707_v55, %v371_v51  ;;  %v380_v51 = vld [vmem:[#allocation2 + $0x180] sm:$0xff] }
 0x1fe   :  { %1909 = vst [vmem:[#allocation2 + $0x138] sm:$0xff] %v1845_v57  ;;  %v1422_v58 = vpop.f32.mrb[80].mxu0  ;;  %v381_v57 = vld [vmem:[#allocation2 + $0x188] sm:$0xff] }
 0x1ff   :  { %v1711_v60 = vpop.f32.mrb[80].mxu1  ;;  %v1424_v61 = vpop.f32.mrb[81].mxu0 }
 0x200   :  { %v1712_v62 = vadd.f32 %v1711_v60, %v1422_v58  ;;  %v1713_v63 = vpop.f32.mrb[81].mxu1  ;;  %v1425_v0 = vpop.f32.mrb[82].mxu0 }
 0x201   :  { %v1714_v2 = vpop.f32.mrb[82].mxu1  ;;  %v1427_v3 = vpop.f32.mrb[83].mxu0 }
 0x202   :  { %v1846_v4 = vadd.f32 %v1712_v62, %v372_v59  ;;  %v1715_v5 = vadd.f32 %v1714_v2, %v1425_v0  ;;  %v1716_v6 = vpop.f32.mrb[83].mxu1 }
 0x204   :  { %1910 = vst [vmem:[#allocation2 + $0x140] sm:$0xff] %v1846_v4  ;;  %v1847_v7 = vadd.f32 %v1715_v5, %v373_v1  ;;  %v382_v1 = vld [vmem:[#allocation2 + $0x190] sm:$0xff] }
 0x206   :  { %1911 = vst [vmem:[#allocation2 + $0x148] sm:$0xff] %v1847_v7  ;;  %v1430_v8 = vpop.f32.mrb[84].mxu0  ;;  %v383_v7 = vld [vmem:[#allocation2 + $0x198] sm:$0xff] }
 0x207   :  { %v1719_v10 = vpop.f32.mrb[84].mxu1  ;;  %v1432_v11 = vpop.f32.mrb[85].mxu0 }
 0x208   :  { %v1720_v12 = vadd.f32 %v1719_v10, %v1430_v8  ;;  %v1721_v13 = vpop.f32.mrb[85].mxu1  ;;  %v1433_v14 = vpop.f32.mrb[86].mxu0 }
 0x209   :  { %v1722_v16 = vpop.f32.mrb[86].mxu1  ;;  %v1435_v17 = vpop.f32.mrb[87].mxu0 }
 0x20a   :  { %v1848_v18 = vadd.f32 %v1720_v12, %v374_v9  ;;  %v1723_v19 = vadd.f32 %v1722_v16, %v1433_v14  ;;  %v1724_v20 = vpop.f32.mrb[87].mxu1 }
 0x20c   :  { %1912 = vst [vmem:[#allocation2 + $0x150] sm:$0xff] %v1848_v18  ;;  %v1849_v21 = vadd.f32 %v1723_v19, %v375_v15  ;;  %v384_v15 = vld [vmem:[#allocation2 + $0x1a0] sm:$0xff] }
 0x20e   :  { %1913 = vst [vmem:[#allocation2 + $0x158] sm:$0xff] %v1849_v21  ;;  %v1438_v22 = vpop.f32.mrb[88].mxu0  ;;  %v385_v21 = vld [vmem:[#allocation2 + $0x1a8] sm:$0xff] }
 0x20f   :  { %v1727_v24 = vpop.f32.mrb[88].mxu1  ;;  %v1440_v25 = vpop.f32.mrb[89].mxu0 }
 0x210   :  { %v1728_v26 = vadd.f32 %v1727_v24, %v1438_v22  ;;  %v1729_v27 = vpop.f32.mrb[89].mxu1  ;;  %v1441_v28 = vpop.f32.mrb[90].mxu0 }
 0x211   :  { %v1730_v30 = vpop.f32.mrb[90].mxu1  ;;  %v1443_v31 = vpop.f32.mrb[91].mxu0 }
 0x212   :  { %v1850_v32 = vadd.f32 %v1728_v26, %v376_v23  ;;  %v1731_v33 = vadd.f32 %v1730_v30, %v1441_v28  ;;  %v1732_v34 = vpop.f32.mrb[91].mxu1 }
 0x214   :  { %1914 = vst [vmem:[#allocation2 + $0x160] sm:$0xff] %v1850_v32  ;;  %v1851_v35 = vadd.f32 %v1731_v33, %v377_v29  ;;  %v386_v29 = vld [vmem:[#allocation2 + $0x1b0] sm:$0xff] }
 0x216   :  { %1915 = vst [vmem:[#allocation2 + $0x168] sm:$0xff] %v1851_v35  ;;  %v1446_v36 = vpop.f32.mrb[92].mxu0  ;;  %v387_v35 = vld [vmem:[#allocation2 + $0x1b8] sm:$0xff] }
 0x217   :  { %v1735_v38 = vpop.f32.mrb[92].mxu1  ;;  %v1448_v39 = vpop.f32.mrb[93].mxu0 }
 0x218   :  { %v1736_v40 = vadd.f32 %v1735_v38, %v1446_v36  ;;  %v1737_v41 = vpop.f32.mrb[93].mxu1  ;;  %v1449_v42 = vpop.f32.mrb[94].mxu0 }
 0x219   :  { %v1738_v44 = vpop.f32.mrb[94].mxu1  ;;  %v1451_v45 = vpop.f32.mrb[95].mxu0 }
 0x21a   :  { %v1852_v46 = vadd.f32 %v1736_v40, %v378_v37  ;;  %v1739_v47 = vadd.f32 %v1738_v44, %v1449_v42  ;;  %v1740_v48 = vpop.f32.mrb[95].mxu1 }
 0x21c   :  { %1916 = vst [vmem:[#allocation2 + $0x170] sm:$0xff] %v1852_v46  ;;  %v1853_v49 = vadd.f32 %v1739_v47, %v379_v43  ;;  %v388_v43 = vld [vmem:[#allocation2 + $0x1c0] sm:$0xff] }
 0x21e   :  { %1917 = vst [vmem:[#allocation2 + $0x178] sm:$0xff] %v1853_v49  ;;  %v1454_v50 = vpop.f32.mrb[96].mxu0  ;;  %v389_v49 = vld [vmem:[#allocation2 + $0x1c8] sm:$0xff] }
 0x21f   :  { %v1743_v52 = vpop.f32.mrb[96].mxu1  ;;  %v1456_v53 = vpop.f32.mrb[97].mxu0 }
 0x220   :  { %v1744_v54 = vadd.f32 %v1743_v52, %v1454_v50  ;;  %v1745_v55 = vpop.f32.mrb[97].mxu1  ;;  %v1457_v56 = vpop.f32.mrb[98].mxu0 }
 0x221   :  { %v1746_v58 = vpop.f32.mrb[98].mxu1  ;;  %v1459_v59 = vpop.f32.mrb[99].mxu0 }
 0x222   :  { %v1854_v60 = vadd.f32 %v1744_v54, %v380_v51  ;;  %v1747_v61 = vadd.f32 %v1746_v58, %v1457_v56  ;;  %v1748_v62 = vpop.f32.mrb[99].mxu1 }
 0x224   :  { %1918 = vst [vmem:[#allocation2 + $0x180] sm:$0xff] %v1854_v60  ;;  %v1855_v63 = vadd.f32 %v1747_v61, %v381_v57  ;;  %v390_v57 = vld [vmem:[#allocation2 + $0x1d0] sm:$0xff] }
 0x226   :  { %1919 = vst [vmem:[#allocation2 + $0x188] sm:$0xff] %v1855_v63  ;;  %v1462_v0 = vpop.f32.mrb[100].mxu0  ;;  %v391_v63 = vld [vmem:[#allocation2 + $0x1d8] sm:$0xff] }
 0x227   :  { %v1751_v2 = vpop.f32.mrb[100].mxu1  ;;  %v1464_v3 = vpop.f32.mrb[101].mxu0 }
 0x228   :  { %v1752_v4 = vadd.f32 %v1751_v2, %v1462_v0  ;;  %v1753_v5 = vpop.f32.mrb[101].mxu1  ;;  %v1465_v6 = vpop.f32.mrb[102].mxu0 }
 0x229   :  { %v1754_v8 = vpop.f32.mrb[102].mxu1  ;;  %v1467_v9 = vpop.f32.mrb[103].mxu0 }
 0x22a   :  { %v1856_v10 = vadd.f32 %v1752_v4, %v382_v1  ;;  %v1755_v11 = vadd.f32 %v1754_v8, %v1465_v6  ;;  %v1756_v12 = vpop.f32.mrb[103].mxu1 }
 0x22c   :  { %1920 = vst [vmem:[#allocation2 + $0x190] sm:$0xff] %v1856_v10  ;;  %v1857_v13 = vadd.f32 %v1755_v11, %v383_v7  ;;  %v392_v7 = vld [vmem:[#allocation2 + $0x1e0] sm:$0xff] }
 0x22e   :  { %1921 = vst [vmem:[#allocation2 + $0x198] sm:$0xff] %v1857_v13  ;;  %v1470_v14 = vpop.f32.mrb[104].mxu0  ;;  %v393_v13 = vld [vmem:[#allocation2 + $0x1e8] sm:$0xff] }
 0x22f   :  { %v1759_v16 = vpop.f32.mrb[104].mxu1  ;;  %v1472_v17 = vpop.f32.mrb[105].mxu0 }
 0x230   :  { %v1760_v18 = vadd.f32 %v1759_v16, %v1470_v14  ;;  %v1761_v19 = vpop.f32.mrb[105].mxu1  ;;  %v1473_v20 = vpop.f32.mrb[106].mxu0 }
 0x231   :  { %v1762_v22 = vpop.f32.mrb[106].mxu1  ;;  %v1475_v23 = vpop.f32.mrb[107].mxu0 }
 0x232   :  { %v1858_v24 = vadd.f32 %v1760_v18, %v384_v15  ;;  %v1763_v25 = vadd.f32 %v1762_v22, %v1473_v20  ;;  %v1764_v26 = vpop.f32.mrb[107].mxu1 }
 0x234   :  { %1922 = vst [vmem:[#allocation2 + $0x1a0] sm:$0xff] %v1858_v24  ;;  %v1859_v27 = vadd.f32 %v1763_v25, %v385_v21  ;;  %v394_v21 = vld [vmem:[#allocation2 + $0x1f0] sm:$0xff] }
 0x236   :  { %1923 = vst [vmem:[#allocation2 + $0x1a8] sm:$0xff] %v1859_v27  ;;  %v1478_v28 = vpop.f32.mrb[108].mxu0  ;;  %v395_v27 = vld [vmem:[#allocation2 + $0x1f8] sm:$0xff] }
 0x237   :  { %v1767_v30 = vpop.f32.mrb[108].mxu1  ;;  %v1480_v31 = vpop.f32.mrb[109].mxu0 }
 0x238   :  { %v1768_v32 = vadd.f32 %v1767_v30, %v1478_v28  ;;  %v1769_v33 = vpop.f32.mrb[109].mxu1  ;;  %v1481_v34 = vpop.f32.mrb[110].mxu0 }
 0x239   :  { %v1770_v36 = vpop.f32.mrb[110].mxu1  ;;  %v1483_v37 = vpop.f32.mrb[111].mxu0 }
 0x23a   :  { %v1860_v38 = vadd.f32 %v1768_v32, %v386_v29  ;;  %v1771_v39 = vadd.f32 %v1770_v36, %v1481_v34  ;;  %v1772_v40 = vpop.f32.mrb[111].mxu1 }
 0x23c   :  { %1924 = vst [vmem:[#allocation2 + $0x1b0] sm:$0xff] %v1860_v38  ;;  %v1861_v41 = vadd.f32 %v1771_v39, %v387_v35 }
 0x23e   :  { %1925 = vst [vmem:[#allocation2 + $0x1b8] sm:$0xff] %v1861_v41  ;;  %v1486_v42 = vpop.f32.mrb[112].mxu0 }
 0x23f   :  { %v1775_v44 = vpop.f32.mrb[112].mxu1  ;;  %v1488_v45 = vpop.f32.mrb[113].mxu0 }
 0x240   :  { %v1776_v46 = vadd.f32 %v1775_v44, %v1486_v42  ;;  %v1777_v47 = vpop.f32.mrb[113].mxu1  ;;  %v1489_v48 = vpop.f32.mrb[114].mxu0 }
 0x241   :  { %v1778_v50 = vpop.f32.mrb[114].mxu1  ;;  %v1491_v51 = vpop.f32.mrb[115].mxu0 }
 0x242   :  { %v1862_v52 = vadd.f32 %v1776_v46, %v388_v43  ;;  %v1779_v53 = vadd.f32 %v1778_v50, %v1489_v48  ;;  %v1780_v54 = vpop.f32.mrb[115].mxu1 }
 0x244   :  { %1926 = vst [vmem:[#allocation2 + $0x1c0] sm:$0xff] %v1862_v52  ;;  %v1863_v55 = vadd.f32 %v1779_v53, %v389_v49 }
 0x246   :  { %1927 = vst [vmem:[#allocation2 + $0x1c8] sm:$0xff] %v1863_v55  ;;  %v1494_v56 = vpop.f32.mrb[116].mxu0 }
 0x247   :  { %v1783_v58 = vpop.f32.mrb[116].mxu1  ;;  %v1496_v59 = vpop.f32.mrb[117].mxu0 }
 0x248   :  { %v1784_v60 = vadd.f32 %v1783_v58, %v1494_v56  ;;  %v1785_v61 = vpop.f32.mrb[117].mxu1  ;;  %v1497_v62 = vpop.f32.mrb[118].mxu0 }
 0x249   :  { %v1786_v0 = vpop.f32.mrb[118].mxu1  ;;  %v1499_v1 = vpop.f32.mrb[119].mxu0 }
 0x24a   :  { %v1864_v2 = vadd.f32 %v1784_v60, %v390_v57  ;;  %v1787_v3 = vadd.f32 %v1786_v0, %v1497_v62  ;;  %v1788_v4 = vpop.f32.mrb[119].mxu1 }
 0x24c   :  { %1928 = vst [vmem:[#allocation2 + $0x1d0] sm:$0xff] %v1864_v2  ;;  %v1865_v5 = vadd.f32 %v1787_v3, %v391_v63 }
 0x24e   :  { %1929 = vst [vmem:[#allocation2 + $0x1d8] sm:$0xff] %v1865_v5  ;;  %v1502_v6 = vpop.f32.mrb[120].mxu0 }
 0x24f   :  { %v1791_v8 = vpop.f32.mrb[120].mxu1  ;;  %v1504_v9 = vpop.f32.mrb[121].mxu0 }
 0x250   :  { %v1792_v10 = vadd.f32 %v1791_v8, %v1502_v6  ;;  %v1793_v11 = vpop.f32.mrb[121].mxu1  ;;  %v1505_v12 = vpop.f32.mrb[122].mxu0 }
 0x251   :  { %v1794_v14 = vpop.f32.mrb[122].mxu1  ;;  %v1507_v15 = vpop.f32.mrb[123].mxu0 }
 0x252   :  { %v1866_v16 = vadd.f32 %v1792_v10, %v392_v7  ;;  %v1795_v17 = vadd.f32 %v1794_v14, %v1505_v12  ;;  %v1796_v18 = vpop.f32.mrb[123].mxu1 }
 0x254   :  { %1930 = vst [vmem:[#allocation2 + $0x1e0] sm:$0xff] %v1866_v16  ;;  %v1867_v19 = vadd.f32 %v1795_v17, %v393_v13 }
 0x256   :  { %1931 = vst [vmem:[#allocation2 + $0x1e8] sm:$0xff] %v1867_v19  ;;  %v1510_v20 = vpop.f32.mrb[124].mxu0 }
 0x257   :  { %v1799_v22 = vpop.f32.mrb[124].mxu1  ;;  %v1512_v23 = vpop.f32.mrb[125].mxu0 }
 0x258   :  { %v1800_v24 = vadd.f32 %v1799_v22, %v1510_v20  ;;  %v1801_v25 = vpop.f32.mrb[125].mxu1  ;;  %v1513_v26 = vpop.f32.mrb[126].mxu0 }
 0x259   :  { %v1802_v28 = vpop.f32.mrb[126].mxu1  ;;  %v1515_v29 = vpop.f32.mrb[127].mxu0 }
 0x25a   :  { %v1868_v30 = vadd.f32 %v1800_v24, %v394_v21  ;;  %v1803_v31 = vadd.f32 %v1802_v28, %v1513_v26  ;;  %v1804_v32 = vpop.f32.mrb[127].mxu1 }
 0x25c   :  { %1932 = vst [vmem:[#allocation2 + $0x1f0] sm:$0xff] %v1868_v30  ;;  %v1869_v33 = vadd.f32 %v1803_v31, %v395_v27 }
 0x25e   :  { %1933 = vst [vmem:[#allocation2 + $0x1f8] sm:$0xff] %v1869_v33 }
 0x25f PF:  { %v1937_v34 = vld [vmem:[#allocation2] sm:$0xff]  ;;  %v1938_v35 = vld [vmem:[#allocation2 + $0x8] sm:$0xff]  ;;  %v1939_v36 = vld [vmem:[#allocation2 + $0x10] sm:$0xff]  ;;  %s2587_s2 = smov [#allocation12]  }
 0x260   :  { %2001 = vst [vmem:[#allocation12] sm:$0xff] %v1937_v34  ;;  %2002 = vst [vmem:[#allocation12 + $0x8] sm:$0xff] %v1938_v35  ;;  %v1940_v37 = vld [vmem:[#allocation2 + $0x18] sm:$0xff]  ;;  %v1941_v38 = vld [vmem:[#allocation2 + $0x20] sm:$0xff]  ;;  %s2070_s6 = sshll.u32 %s2587_s2, 4  ;;  %s2071_s6 = int_to_ptr.vmem [resolvable:$true] %s2070_s6 }
 0x261   :  { %2003 = vst [vmem:[#allocation12 + $0x10] sm:$0xff] %v1939_v36  ;;  %v1942_v39 = vld [vmem:[#allocation2 + $0x28] sm:$0xff]  ;;  %2004 = vst [vmem:[#allocation12 + $0x18] sm:$0xff] %v1940_v37  ;;  %v1943_v40 = vld [vmem:[#allocation2 + $0x30] sm:$0xff]  ;;  %s2548_s7 = scalar_lea.vmem %s2071_s6, 8192  ;;  %p2553_p13 = scmp.lt.s32.totalorder %s2071_s6, %s2071_s6 }
 0x262   :  { %2005 = vst [vmem:[#allocation12 + $0x20] sm:$0xff] %v1941_v38  ;;  %2006 = vst [vmem:[#allocation12 + $0x28] sm:$0xff] %v1942_v39  ;;  %v1944_v41 = vld [vmem:[#allocation2 + $0x38] sm:$0xff]  ;;  %v1945_v42 = vld [vmem:[#allocation2 + $0x40] sm:$0xff]  ;;  %p2549_p12 = scmp.ne.s32.totalorder %s2071_s6, %s2548_s7  ;;  %p2554_p0 = scmp.lt.s32.totalorder %s2548_s7, %s2548_s7 }
 0x263   :  { %2007 = vst [vmem:[#allocation12 + $0x30] sm:$0xff] %v1943_v40  ;;  %2008 = vst [vmem:[#allocation12 + $0x38] sm:$0xff] %v1944_v41  ;;  %v1946_v43 = vld [vmem:[#allocation2 + $0x48] sm:$0xff]  ;;  %v1947_v44 = vld [vmem:[#allocation2 + $0x50] sm:$0xff] }
 0x264   :  { %2009 = vst [vmem:[#allocation12 + $0x40] sm:$0xff] %v1945_v42  ;;  %v1948_v45 = vld [vmem:[#allocation2 + $0x58] sm:$0xff]  ;;  %2010 = vst [vmem:[#allocation12 + $0x48] sm:$0xff] %v1946_v43  ;;  %v1949_v46 = vld [vmem:[#allocation2 + $0x60] sm:$0xff]  ;;  %p2555_p1 = por %p2554_p0, %p2553_p13 }
 0x265   :  { %2011 = vst [vmem:[#allocation12 + $0x50] sm:$0xff] %v1947_v44  ;;  %2012 = vst [vmem:[#allocation12 + $0x58] sm:$0xff] %v1948_v45  ;;  %v1950_v47 = vld [vmem:[#allocation2 + $0x68] sm:$0xff]  ;;  %v1951_v48 = vld [vmem:[#allocation2 + $0x70] sm:$0xff] }
 0x266   :  { %2013 = vst [vmem:[#allocation12 + $0x60] sm:$0xff] %v1949_v46  ;;  %2014 = vst [vmem:[#allocation12 + $0x68] sm:$0xff] %v1950_v47  ;;  %v1952_v49 = vld [vmem:[#allocation2 + $0x78] sm:$0xff]  ;;  %v1953_v50 = vld [vmem:[#allocation2 + $0x80] sm:$0xff]  ;;  %p2556_p2 = pnand %p2555_p1, %p2549_p12 }
 0x267   :  { %2015 = vst [vmem:[#allocation12 + $0x70] sm:$0xff] %v1951_v48  ;;  %v1954_v51 = vld [vmem:[#allocation2 + $0x88] sm:$0xff]  ;;  %2016 = vst [vmem:[#allocation12 + $0x78] sm:$0xff] %v1952_v49  ;;  %v1955_v52 = vld [vmem:[#allocation2 + $0x90] sm:$0xff] }
 0x268   :  { %2017 = vst [vmem:[#allocation12 + $0x80] sm:$0xff] %v1953_v50  ;;  %2018 = vst [vmem:[#allocation12 + $0x88] sm:$0xff] %v1954_v51  ;;  %v1956_v53 = vld [vmem:[#allocation2 + $0x98] sm:$0xff]  ;;  %v1957_v54 = vld [vmem:[#allocation2 + $0xa0] sm:$0xff] }
 0x269   :  { %2019 = vst [vmem:[#allocation12 + $0x90] sm:$0xff] %v1955_v52  ;;  %2020 = vst [vmem:[#allocation12 + $0x98] sm:$0xff] %v1956_v53  ;;  %v1958_v55 = vld [vmem:[#allocation2 + $0xa8] sm:$0xff]  ;;  %v1959_v56 = vld [vmem:[#allocation2 + $0xb0] sm:$0xff] }
 0x26a   :  { %2021 = vst [vmem:[#allocation12 + $0xa0] sm:$0xff] %v1957_v54  ;;  %v1960_v57 = vld [vmem:[#allocation2 + $0xb8] sm:$0xff]  ;;  %2022 = vst [vmem:[#allocation12 + $0xa8] sm:$0xff] %v1958_v55  ;;  %v1961_v58 = vld [vmem:[#allocation2 + $0xc0] sm:$0xff] }
 0x26b   :  { %2023 = vst [vmem:[#allocation12 + $0xb0] sm:$0xff] %v1959_v56  ;;  %2024 = vst [vmem:[#allocation12 + $0xb8] sm:$0xff] %v1960_v57  ;;  %v1962_v59 = vld [vmem:[#allocation2 + $0xc8] sm:$0xff]  ;;  %v1963_v60 = vld [vmem:[#allocation2 + $0xd0] sm:$0xff] }
 0x26c   :  { %2025 = vst [vmem:[#allocation12 + $0xc0] sm:$0xff] %v1961_v58  ;;  %2026 = vst [vmem:[#allocation12 + $0xc8] sm:$0xff] %v1962_v59  ;;  %v1964_v61 = vld [vmem:[#allocation2 + $0xd8] sm:$0xff]  ;;  %v1965_v62 = vld [vmem:[#allocation2 + $0xe0] sm:$0xff] }
 0x26d   :  { %2027 = vst [vmem:[#allocation12 + $0xd0] sm:$0xff] %v1963_v60  ;;  %v1966_v63 = vld [vmem:[#allocation2 + $0xe8] sm:$0xff]  ;;  %2028 = vst [vmem:[#allocation12 + $0xd8] sm:$0xff] %v1964_v61  ;;  %v1967_v0 = vld [vmem:[#allocation2 + $0xf0] sm:$0xff] }
 0x26e   :  { %2029 = vst [vmem:[#allocation12 + $0xe0] sm:$0xff] %v1965_v62  ;;  %2030 = vst [vmem:[#allocation12 + $0xe8] sm:$0xff] %v1966_v63  ;;  %v1968_v1 = vld [vmem:[#allocation2 + $0xf8] sm:$0xff]  ;;  %v1969_v2 = vld [vmem:[#allocation2 + $0x100] sm:$0xff] }
 0x26f   :  { %2031 = vst [vmem:[#allocation12 + $0xf0] sm:$0xff] %v1967_v0  ;;  %2032 = vst [vmem:[#allocation12 + $0xf8] sm:$0xff] %v1968_v1  ;;  %v1970_v3 = vld [vmem:[#allocation2 + $0x108] sm:$0xff]  ;;  %v1971_v4 = vld [vmem:[#allocation2 + $0x110] sm:$0xff] }
 0x270   :  { %2033 = vst [vmem:[#allocation12 + $0x100] sm:$0xff] %v1969_v2  ;;  %v1972_v5 = vld [vmem:[#allocation2 + $0x118] sm:$0xff]  ;;  %2034 = vst [vmem:[#allocation12 + $0x108] sm:$0xff] %v1970_v3  ;;  %v1973_v6 = vld [vmem:[#allocation2 + $0x120] sm:$0xff] }
 0x271   :  { %2035 = vst [vmem:[#allocation12 + $0x110] sm:$0xff] %v1971_v4  ;;  %2036 = vst [vmem:[#allocation12 + $0x118] sm:$0xff] %v1972_v5  ;;  %v1974_v7 = vld [vmem:[#allocation2 + $0x128] sm:$0xff]  ;;  %v1975_v8 = vld [vmem:[#allocation2 + $0x130] sm:$0xff] }
 0x272   :  { %2037 = vst [vmem:[#allocation12 + $0x120] sm:$0xff] %v1973_v6  ;;  %2038 = vst [vmem:[#allocation12 + $0x128] sm:$0xff] %v1974_v7  ;;  %v1976_v9 = vld [vmem:[#allocation2 + $0x138] sm:$0xff]  ;;  %v1977_v10 = vld [vmem:[#allocation2 + $0x140] sm:$0xff] }
 0x273   :  { %2039 = vst [vmem:[#allocation12 + $0x130] sm:$0xff] %v1975_v8  ;;  %v1978_v11 = vld [vmem:[#allocation2 + $0x148] sm:$0xff]  ;;  %2040 = vst [vmem:[#allocation12 + $0x138] sm:$0xff] %v1976_v9  ;;  %v1979_v12 = vld [vmem:[#allocation2 + $0x150] sm:$0xff] }
 0x274   :  { %2041 = vst [vmem:[#allocation12 + $0x140] sm:$0xff] %v1977_v10  ;;  %2042 = vst [vmem:[#allocation12 + $0x148] sm:$0xff] %v1978_v11  ;;  %v1980_v13 = vld [vmem:[#allocation2 + $0x158] sm:$0xff]  ;;  %v1981_v14 = vld [vmem:[#allocation2 + $0x160] sm:$0xff] }
 0x275   :  { %2043 = vst [vmem:[#allocation12 + $0x150] sm:$0xff] %v1979_v12  ;;  %2044 = vst [vmem:[#allocation12 + $0x158] sm:$0xff] %v1980_v13  ;;  %v1982_v15 = vld [vmem:[#allocation2 + $0x168] sm:$0xff]  ;;  %v1983_v16 = vld [vmem:[#allocation2 + $0x170] sm:$0xff] }
 0x276   :  { %2045 = vst [vmem:[#allocation12 + $0x160] sm:$0xff] %v1981_v14  ;;  %v1984_v17 = vld [vmem:[#allocation2 + $0x178] sm:$0xff]  ;;  %2046 = vst [vmem:[#allocation12 + $0x168] sm:$0xff] %v1982_v15  ;;  %v1985_v18 = vld [vmem:[#allocation2 + $0x180] sm:$0xff] }
 0x277   :  { %2047 = vst [vmem:[#allocation12 + $0x170] sm:$0xff] %v1983_v16  ;;  %2048 = vst [vmem:[#allocation12 + $0x178] sm:$0xff] %v1984_v17  ;;  %v1986_v19 = vld [vmem:[#allocation2 + $0x188] sm:$0xff]  ;;  %v1987_v20 = vld [vmem:[#allocation2 + $0x190] sm:$0xff] }
 0x278   :  { %2049 = vst [vmem:[#allocation12 + $0x180] sm:$0xff] %v1985_v18  ;;  %2050 = vst [vmem:[#allocation12 + $0x188] sm:$0xff] %v1986_v19  ;;  %v1988_v21 = vld [vmem:[#allocation2 + $0x198] sm:$0xff]  ;;  %v1989_v22 = vld [vmem:[#allocation2 + $0x1a0] sm:$0xff] }
 0x279   :  { %2051 = vst [vmem:[#allocation12 + $0x190] sm:$0xff] %v1987_v20  ;;  %v1990_v23 = vld [vmem:[#allocation2 + $0x1a8] sm:$0xff]  ;;  %2052 = vst [vmem:[#allocation12 + $0x198] sm:$0xff] %v1988_v21  ;;  %v1991_v24 = vld [vmem:[#allocation2 + $0x1b0] sm:$0xff] }
 0x27a   :  { %2053 = vst [vmem:[#allocation12 + $0x1a0] sm:$0xff] %v1989_v22  ;;  %2054 = vst [vmem:[#allocation12 + $0x1a8] sm:$0xff] %v1990_v23  ;;  %v1992_v25 = vld [vmem:[#allocation2 + $0x1b8] sm:$0xff]  ;;  %v1993_v26 = vld [vmem:[#allocation2 + $0x1c0] sm:$0xff] }
 0x27b   :  { %2055 = vst [vmem:[#allocation12 + $0x1b0] sm:$0xff] %v1991_v24  ;;  %2056 = vst [vmem:[#allocation12 + $0x1b8] sm:$0xff] %v1992_v25  ;;  %v1994_v27 = vld [vmem:[#allocation2 + $0x1c8] sm:$0xff]  ;;  %v1995_v28 = vld [vmem:[#allocation2 + $0x1d0] sm:$0xff] }
 0x27c   :  { %2057 = vst [vmem:[#allocation12 + $0x1c0] sm:$0xff] %v1993_v26  ;;  %v1996_v29 = vld [vmem:[#allocation2 + $0x1d8] sm:$0xff]  ;;  %2058 = vst [vmem:[#allocation12 + $0x1c8] sm:$0xff] %v1994_v27  ;;  %v1997_v30 = vld [vmem:[#allocation2 + $0x1e0] sm:$0xff] }
 0x27d   :  { %2059 = vst [vmem:[#allocation12 + $0x1d0] sm:$0xff] %v1995_v28  ;;  %2060 = vst [vmem:[#allocation12 + $0x1d8] sm:$0xff] %v1996_v29  ;;  %v1998_v31 = vld [vmem:[#allocation2 + $0x1e8] sm:$0xff]  ;;  %v1999_v32 = vld [vmem:[#allocation2 + $0x1f0] sm:$0xff] }
 0x27e   :  { %2061 = vst [vmem:[#allocation12 + $0x1e0] sm:$0xff] %v1997_v30  ;;  %2062 = vst [vmem:[#allocation12 + $0x1e8] sm:$0xff] %v1998_v31  ;;  %v2000_v33 = vld [vmem:[#allocation2 + $0x1f8] sm:$0xff] }
 0x27f   :  { %2063 = vst [vmem:[#allocation12 + $0x1f0] sm:$0xff] %v1999_v32  ;;  %2064 = vst [vmem:[#allocation12 + $0x1f8] sm:$0xff] %v2000_v33 }
 0x280   :  { %2559 = shalt.err (!%p2556_p2)
}
 0x281   :  { %s2560_s10 = scalar_lea.hbm %s2804_s5, 8192 }
 0x282   :  { %p2561_p3 = scmp.ne.s32.totalorder %s2804_s5, %s2560_s10  ;;  %p2564_p4 = scmp.lt.u32.totalorder %s2560_s10, %s2804_s5 }
 0x284   :  { %p2566_p5 = pnand %p2564_p4, %p2561_p3 }
 0x286   :  { %2569 = shalt.err (!%p2566_p5)
}
 0x287   :  { %s2588_s15 = smov 128   ;;  %s2589_s16 = smov 8  }
 0x288   :  { %2076 = dma.vmem_to_hbm [thread:$0]  %s2071_s6, 8192, %s2804_s5, [#allocation9], %s2588_s15, %s2588_s15, %s2589_s16  }
 0x289   :  { %2576 = dma.done.wait [#allocation9], 8192  }
 0x28a   :  { %2577 = vsyncadd [#allocation9], 4294959104 }
 0x28b   :  { %2080 = vsyncpa [#allocation8], 1 }
 0x28c   :  { %2081 = vsyncpa [#allocation11], 1 }
 0x28d   :  { %2082 = vsyncpa [#allocation9], 1 }

</bundles_post_ra>
